<compile_context>
chip_gen: v7x
topology: tpu7x:2x2x1
jax: 0.10.0
libtpu: 0.0.40
codegen_flags: <defaults>
</compile_context>

<pallas_src>
import functools

import jax
import jax.numpy as jnp
import numpy as np
from jax.experimental import pallas as pl
from jax.experimental.pallas import tpu as pltpu


# ---------------------------------------------------------------------------
# One-time host-side weight preparation (all re-layouts out of the hot path).
# Input weights are in PyTorch layout.
# ---------------------------------------------------------------------------
def prepare_params(params):
    w1 = np.asarray(params["conv1_w"], np.float32)        # (6, 1, 5, 5)
    b1 = np.asarray(params["conv1_b"], np.float32)        # (6,)
    w2 = np.asarray(params["conv2_w"], np.float32)        # (16, 6, 5, 5)
    b2 = np.asarray(params["conv2_b"], np.float32)        # (16,)
    fc1_w = np.asarray(params["fc1_w"], np.float32)       # (64, 256)
    fc1_b = np.asarray(params["fc1_b"], np.float32)       # (64,)
    out_w = np.asarray(params["lenetout_w"], np.float32)  # (hx, 64)
    out_b = np.asarray(params["lenetout_b"], np.float32)
    wy = np.asarray(params["enc_y_w"], np.float32)        # (hy, n_class)
    by = np.asarray(params["enc_y_b"], np.float32)
    wxy = np.asarray(params["enc_xy_w"], np.float32)      # (outdim, hx+hy)
    bxy = np.asarray(params["enc_xy_b"], np.float32)
    hx = out_w.shape[0]

    # conv1 (1->6, 5x5, 28->24) banded matrices, one per kernel row i.
    # out[oh, col] = sum_i x[oh+i, :] @ w1b[i]
    # col = (ow % 2)*72 + (ow // 2)*6 + co  (pool-parity-major so the 2x2 width
    # pool is max(cols[:72], cols[72:])).
    w1b = np.zeros((5, 28, 144), np.float32)
    b1row = np.zeros((1, 144), np.float32)
    for ow in range(24):
        c0 = (ow % 2) * 72 + (ow // 2) * 6
        b1row[0, c0:c0 + 6] = b1
        for i in range(5):
            for j in range(5):
                w1b[i, ow + j, c0:c0 + 6] = w1[:, 0, i, j]

    # conv2 (6->16, 5x5, 12->8) banded matrices.  Pooled conv1 map per image is
    # (12, 72) with col = ow_p*6 + ci.  Output col = (ow%2)*64 + (ow//2)*16 + co.
    w2b = np.zeros((5, 72, 128), np.float32)
    b2row = np.zeros((1, 128), np.float32)
    for ow in range(8):
        c0 = (ow % 2) * 64 + (ow // 2) * 16
        b2row[0, c0:c0 + 16] = b2
        for i in range(5):
            for j in range(5):
                for ci in range(6):
                    w2b[i, (ow + j) * 6 + ci, c0:c0 + 16] = w2[:, ci, i, j]

    # fc1: kernel consumes a lane-dense (B, 256) buffer with column index
    # ohp*64 + owp*16 + c.  PyTorch flatten order is c*16 + ohp*4 + owp, so the
    # permutation is folded into the (256, 64) weight here (one-time).
    wfc1 = np.zeros((256, 64), np.float32)
    for ohp in range(4):
        for owp in range(4):
            for c in range(16):
                wfc1[ohp * 64 + owp * 16 + c, :] = fc1_w[:, c * 16 + ohp * 4 + owp]

    return {
        # backbone matmul weights in bf16 (f32 accumulation in-kernel)
        "w1b": jnp.asarray(w1b, jnp.bfloat16), "b1": jnp.asarray(b1row),
        "w2b": jnp.asarray(w2b, jnp.bfloat16), "b2": jnp.asarray(b2row),
        "wfc1": jnp.asarray(wfc1, jnp.bfloat16),
        "bfc1": jnp.asarray(fc1_b.reshape(1, -1)),
        # tiny head matmuls stay f32
        "wout": jnp.asarray(np.ascontiguousarray(out_w.T)),          # (64, hx)
        "bout": jnp.asarray(out_b.reshape(1, -1)),
        "wy": jnp.asarray(np.ascontiguousarray(wy.T)),               # (nc, hy)
        "by": jnp.asarray(by.reshape(1, -1)),
        "wxyx": jnp.asarray(np.ascontiguousarray(wxy[:, :hx].T)),    # (hx, outdim)
        "wxyy": jnp.asarray(np.ascontiguousarray(wxy[:, hx:].T)),    # (hy, outdim)
        "bxy": jnp.asarray(bxy.reshape(1, -1)),
    }


# ---------------------------------------------------------------------------
# The single fused kernel.
# ---------------------------------------------------------------------------
def _make_fused_kernel(B, hard):
    f32 = jnp.float32
    bf16 = jnp.bfloat16
    R1 = B * 24   # conv1 output rows, flattened over batch
    R2 = B * 16   # conv2 output rows (uncompacted: valid at even offsets)

    def kernel(x_ref, y_ref,
               w1b_ref, b1_ref, w2b_ref, b2_ref,
               wfc1_ref, bfc1_ref, wout_ref, bout_ref,
               wy_ref, by_ref, wxyx_ref, wxyy_ref, bxy_ref,
               g_ref, temp_ref,
               out_ref,
               s1_ref, s2_ref, feat_ref):
        # ---------------- conv1: 5 batch-fused banded matmuls --------------
        lhs = x_ref[:, 0:24, :].reshape(R1, 28).astype(bf16)
        acc1 = jnp.dot(lhs, w1b_ref[0], preferred_element_type=f32)
        for i in range(1, 5):
            lhs = x_ref[:, i:i + 24, :].reshape(R1, 28).astype(bf16)
            acc1 = acc1 + jnp.dot(lhs, w1b_ref[i], preferred_element_type=f32)
        c1 = jnp.maximum(acc1 + b1_ref[...], 0.0)            # (R1, 144)
        c1w = jnp.maximum(c1[:, 0:72], c1[:, 72:144])        # width pool (R1, 72)

        # 2x2 height pool, kept uncompacted: valid pooled row p at offset 2p.
        # (single full-block store + one offset load; no per-row masked stores)
        s1_ref[0:R1, :] = c1w
        s1_ref[R1:R1 + 8, :] = jnp.zeros((8, 72), f32)        # deterministic pad
        shifted = s1_ref[1:R1 + 1, :]                         # row r -> c1w[r+1]
        c1p = jnp.maximum(c1w, shifted)                       # valid at even rows
        c1p3 = c1p.reshape(B, 24, 72)

        # ---------------- conv2: 5 batch-fused banded matmuls --------------
        # Band offsets are doubled to read the uncompacted pooled map; only the
        # even output rows are valid (odd rows are garbage and never consumed).
        lhs = c1p3[:, 0:16, :].reshape(R2, 72).astype(bf16)
        acc2 = jnp.dot(lhs, w2b_ref[0], preferred_element_type=f32)
        for i in range(1, 5):
            lhs = c1p3[:, 2 * i:2 * i + 16, :].reshape(R2, 72).astype(bf16)
            acc2 = acc2 + jnp.dot(lhs, w2b_ref[i], preferred_element_type=f32)
        c2 = jnp.maximum(acc2 + b2_ref[...], 0.0)             # (R2, 128)
        c2w = jnp.maximum(c2[:, 0:64], c2[:, 64:128])         # width pool (R2, 64)
        s2_ref[...] = c2w

        # 2x2 height pool + flatten -> lane-dense (B, 256) fc1 input.
        # Valid conv2 row oh lives at offset 2*oh, so pooled plane p pairs rows
        # 4p and 4p+2 of each 16-row image slab (strided ref loads, stride 16).
        for p in range(4):
            ra = s2_ref[pl.ds(4 * p, B, stride=16), :]
            rb = s2_ref[pl.ds(4 * p + 2, B, stride=16), :]
            feat_ref[:, 64 * p:64 * (p + 1)] = jnp.maximum(ra, rb)

        # ---------------- fc1 + lenetout ------------------------------------
        h3 = jnp.maximum(
            jnp.dot(feat_ref[...].astype(bf16), wfc1_ref[...],
                    preferred_element_type=f32) + bfc1_ref[...], 0.0)   # (B, 64)
        z1 = jnp.dot(h3, wout_ref[...],
                     preferred_element_type=f32) + bout_ref[...]        # (B, hx)

        # ---------------- policy head (f32 epilogue) -------------------------
        z2 = jnp.dot(y_ref[...], wy_ref[...],
                     preferred_element_type=f32) + by_ref[...]          # (B, hy)

        # F.normalize(cat(z1, z2), p=2, dim=1) then relu; rsqrt on the EUP.
        nsq = (jnp.sum(z1 * z1, axis=1, keepdims=True)
               + jnp.sum(z2 * z2, axis=1, keepdims=True))
        inv = jax.lax.rsqrt(jnp.maximum(nsq, 1e-24))   # == 1/max(||z||, 1e-12)
        z1n = jnp.maximum(z1 * inv, 0.0)
        z2n = jnp.maximum(z2 * inv, 0.0)

        # encoder_xy on the (implicit) concat, split into two matmuls
        z = (jnp.dot(z1n, wxyx_ref[...], preferred_element_type=f32)
             + jnp.dot(z2n, wxyy_ref[...], preferred_element_type=f32)
             + bxy_ref[...])                                            # (B, outdim)

        zm = jnp.mean(z, axis=0, keepdims=True)                         # (1, outdim)

        # per-dim gumbel-softmax over the 2 logits [-m, m], take component 1
        inv_temp = 1.0 / temp_ref[0]
        g = g_ref[...]                                                  # (2, outdim)
        l0 = (-zm + g[0:1, :]) * inv_temp
        l1 = (zm + g[1:2, :]) * inv_temp
        if hard:
            bit1 = (l1 > l0).astype(f32)
        else:
            mx = jnp.maximum(l0, l1)
            e0 = jnp.exp(l0 - mx)
            e1 = jnp.exp(l1 - mx)
            bit1 = e1 / (e0 + e1)

        # final softmax over outdim
        mm = jnp.max(bit1, axis=1, keepdims=True)
        e = jnp.exp(bit1 - mm)
        out_ref[...] = e / jnp.sum(e, axis=1, keepdims=True)

    return kernel


# ---------------------------------------------------------------------------
# Forward wrapper (one gridless pallas_call; jit-compiled).
# ---------------------------------------------------------------------------
@functools.partial(jax.jit, static_argnames=("hard",))
def policy_net_forward(prep, x, y, gumbel, temp, hard):
    B = x.shape[0]
    outdim = prep["bxy"].shape[1]

    x2 = x.reshape(B, 28, 28).astype(jnp.float32)        # NCHW, C=1 -> (B,H,W)
    temp_arr = jnp.asarray(temp, jnp.float32).reshape(1)

    vmem = pl.BlockSpec(memory_space=pltpu.MemorySpace.VMEM)
    smem = pl.BlockSpec(memory_space=pltpu.MemorySpace.SMEM)

    out = pl.pallas_call(
        _make_fused_kernel(B, hard),
        out_shape=jax.ShapeDtypeStruct((1, outdim), jnp.float32),
        in_specs=[vmem] * 16 + [smem],
        out_specs=vmem,
        scratch_shapes=[
            pltpu.VMEM((B * 24 + 8, 72), jnp.float32),   # conv1 pooled (padded)
            pltpu.VMEM((B * 16, 64), jnp.float32),       # conv2 width-pooled
            pltpu.VMEM((B, 256), jnp.float32),           # lane-dense fc1 input
        ],
        cost_estimate=pl.CostEstimate(flops=10_000_000, transcendentals=64,
                                      bytes_accessed=250_000),
    )(x2, y.astype(jnp.float32),
      prep["w1b"], prep["b1"], prep["w2b"], prep["b2"],
      prep["wfc1"], prep["bfc1"], prep["wout"], prep["bout"],
      prep["wy"], prep["by"], prep["wxyx"], prep["wxyy"], prep["bxy"],
      gumbel.astype(jnp.float32), temp_arr)
    return out[0]


# ---------------------------------------------------------------------------
# Synthetic PyTorch-layout parameters (stand-in for the pretrained backbone).
# ---------------------------------------------------------------------------
def init_params(key, n_class, policy_hdim_x, policy_hdim_y, policy_outdim):
    ks = jax.random.split(key, 12)

    def u(k, shape, fan_in):
        s = 1.0 / jnp.sqrt(jnp.float32(fan_in))
        return jax.random.uniform(k, shape, jnp.float32, -s, s)

    hxy = policy_hdim_x + policy_hdim_y
    return {
        "conv1_w": u(ks[0], (6, 1, 5, 5), 1 * 5 * 5),
        "conv1_b": u(ks[1], (6,), 1 * 5 * 5),
        "conv2_w": u(ks[2], (16, 6, 5, 5), 6 * 5 * 5),
        "conv2_b": u(ks[3], (16,), 6 * 5 * 5),
        "fc1_w": u(ks[4], (64, 256), 256),                 # PyTorch (out, in)
        "fc1_b": u(ks[5], (64,), 256),
        "lenetout_w": u(ks[6], (policy_hdim_x, 64), 64),
        "lenetout_b": u(ks[7], (policy_hdim_x,), 64),
        "enc_y_w": u(ks[8], (policy_hdim_y, n_class), n_class),
        "enc_y_b": u(ks[9], (policy_hdim_y,), n_class),
        "enc_xy_w": u(ks[10], (policy_outdim, hxy), hxy),
        "enc_xy_b": u(ks[11], (policy_outdim,), hxy),
    }


if __name__ == "__main__":
    B = 4
    n_class = 10
    policy_hdim_x = 32
    policy_hdim_y = 16
    policy_outdim = 8
    hard = True
    temp = 0.5

    key = jax.random.PRNGKey(0)
    kx, ky, kg, kp = jax.random.split(key, 4)

    # x: NCHW grayscale image batch (emnist/femnist-like), y: one-hot labels
    x = jax.random.normal(kx, (B, 1, 28, 28), jnp.float32)
    labels = jax.random.randint(ky, (B,), 0, n_class)
    y = jax.nn.one_hot(labels, n_class, dtype=jnp.float32)

    # deterministic gumbel noise standing in for F.gumbel_softmax's sampling
    u = jax.random.uniform(kg, (2, policy_outdim), jnp.float32, 1e-6, 1.0 - 1e-6)
    gumbel = -jnp.log(-jnp.log(u))

    params = init_params(kp, n_class, policy_hdim_x, policy_hdim_y, policy_outdim)
    prep = prepare_params(params)           # one-time weight re-layout

    out = policy_net_forward(prep, x, y, gumbel, temp, hard=hard)
    out = jax.block_until_ready(out)

    assert out.shape == (policy_outdim,)
    assert bool(jnp.all(jnp.isfinite(out)))
    print("KERNEL_OK")
</pallas_src>

<mosaic_0001>
module attributes {stable_mosaic.version = 11 : i64} {
  func.func @kernel(%arg0: memref<4x28x28xf32, #tpu.memory_space<vmem>>, %arg1: memref<4x10xf32, #tpu.memory_space<vmem>>, %arg2: memref<5x28x144xbf16, #tpu.memory_space<vmem>>, %arg3: memref<1x144xf32, #tpu.memory_space<vmem>>, %arg4: memref<5x72x128xbf16, #tpu.memory_space<vmem>>, %arg5: memref<1x128xf32, #tpu.memory_space<vmem>>, %arg6: memref<256x64xbf16, #tpu.memory_space<vmem>>, %arg7: memref<1x64xf32, #tpu.memory_space<vmem>>, %arg8: memref<64x32xf32, #tpu.memory_space<vmem>>, %arg9: memref<1x32xf32, #tpu.memory_space<vmem>>, %arg10: memref<10x16xf32, #tpu.memory_space<vmem>>, %arg11: memref<1x16xf32, #tpu.memory_space<vmem>>, %arg12: memref<32x8xf32, #tpu.memory_space<vmem>>, %arg13: memref<16x8xf32, #tpu.memory_space<vmem>>, %arg14: memref<1x8xf32, #tpu.memory_space<vmem>>, %arg15: memref<2x8xf32, #tpu.memory_space<vmem>>, %arg16: memref<1xf32, #tpu.memory_space<smem>>, %arg17: memref<1x8xf32, #tpu.memory_space<vmem>>, %arg18: memref<104x72xf32, #tpu.memory_space<vmem>>, %arg19: memref<64x64xf32, #tpu.memory_space<vmem>>, %arg20: memref<4x256xf32, #tpu.memory_space<vmem>>) attributes {dimension_semantics = [], scalar_prefetch = 0 : i64, scratch_operands = 3 : i64, tpu.core_type = #tpu.core_type<tc>} {
    %c0 = arith.constant 0 : index
    %c0_0 = arith.constant 0 : index
    %c0_1 = arith.constant 0 : index
    %0 = vector.load %arg0[%c0, %c0_0, %c0_1] : memref<4x28x28xf32, #tpu.memory_space<vmem>>, vector<4x24x28xf32>
    %1 = vector.shape_cast %0 : vector<4x24x28xf32> to vector<96x28xf32>
    %2 = arith.truncf %1 : vector<96x28xf32> to vector<96x28xbf16>
    %c0_2 = arith.constant 0 : index
    %c0_3 = arith.constant 0 : index
    %c0_4 = arith.constant 0 : index
    %3 = vector.load %arg2[%c0_2, %c0_3, %c0_4] : memref<5x28x144xbf16, #tpu.memory_space<vmem>>, vector<1x28x144xbf16>
    %4 = vector.shape_cast %3 : vector<1x28x144xbf16> to vector<28x144xbf16>
    %cst = arith.constant dense<0.000000e+00> : vector<96x144xf32>
    %5 = tpu.matmul %2, %4, %cst {dimension_numbers = #tpu.dot_dimension_numbers<[1], [0], [0], [1], [0, 0, 1, 1], [], []>} : vector<96x28xbf16>, vector<28x144xbf16>, vector<96x144xf32> -> vector<96x144xf32>
    %c0_5 = arith.constant 0 : index
    %c1 = arith.constant 1 : index
    %c0_6 = arith.constant 0 : index
    %6 = vector.load %arg0[%c0_5, %c1, %c0_6] : memref<4x28x28xf32, #tpu.memory_space<vmem>>, vector<4x24x28xf32>
    %7 = vector.shape_cast %6 : vector<4x24x28xf32> to vector<96x28xf32>
    %8 = arith.truncf %7 : vector<96x28xf32> to vector<96x28xbf16>
    %c1_7 = arith.constant 1 : index
    %c0_8 = arith.constant 0 : index
    %c0_9 = arith.constant 0 : index
    %9 = vector.load %arg2[%c1_7, %c0_8, %c0_9] : memref<5x28x144xbf16, #tpu.memory_space<vmem>>, vector<1x28x144xbf16>
    %10 = vector.shape_cast %9 : vector<1x28x144xbf16> to vector<28x144xbf16>
    %cst_10 = arith.constant dense<0.000000e+00> : vector<96x144xf32>
    %11 = tpu.matmul %8, %10, %cst_10 {dimension_numbers = #tpu.dot_dimension_numbers<[1], [0], [0], [1], [0, 0, 1, 1], [], []>} : vector<96x28xbf16>, vector<28x144xbf16>, vector<96x144xf32> -> vector<96x144xf32>
    %12 = arith.addf %5, %11 : vector<96x144xf32>
    %c0_11 = arith.constant 0 : index
    %c2 = arith.constant 2 : index
    %c0_12 = arith.constant 0 : index
    %13 = vector.load %arg0[%c0_11, %c2, %c0_12] : memref<4x28x28xf32, #tpu.memory_space<vmem>>, vector<4x24x28xf32>
    %14 = vector.shape_cast %13 : vector<4x24x28xf32> to vector<96x28xf32>
    %15 = arith.truncf %14 : vector<96x28xf32> to vector<96x28xbf16>
    %c2_13 = arith.constant 2 : index
    %c0_14 = arith.constant 0 : index
    %c0_15 = arith.constant 0 : index
    %16 = vector.load %arg2[%c2_13, %c0_14, %c0_15] : memref<5x28x144xbf16, #tpu.memory_space<vmem>>, vector<1x28x144xbf16>
    %17 = vector.shape_cast %16 : vector<1x28x144xbf16> to vector<28x144xbf16>
    %cst_16 = arith.constant dense<0.000000e+00> : vector<96x144xf32>
    %18 = tpu.matmul %15, %17, %cst_16 {dimension_numbers = #tpu.dot_dimension_numbers<[1], [0], [0], [1], [0, 0, 1, 1], [], []>} : vector<96x28xbf16>, vector<28x144xbf16>, vector<96x144xf32> -> vector<96x144xf32>
    %19 = arith.addf %12, %18 : vector<96x144xf32>
    %c0_17 = arith.constant 0 : index
    %c3 = arith.constant 3 : index
    %c0_18 = arith.constant 0 : index
    %20 = vector.load %arg0[%c0_17, %c3, %c0_18] : memref<4x28x28xf32, #tpu.memory_space<vmem>>, vector<4x24x28xf32>
    %21 = vector.shape_cast %20 : vector<4x24x28xf32> to vector<96x28xf32>
    %22 = arith.truncf %21 : vector<96x28xf32> to vector<96x28xbf16>
    %c3_19 = arith.constant 3 : index
    %c0_20 = arith.constant 0 : index
    %c0_21 = arith.constant 0 : index
    %23 = vector.load %arg2[%c3_19, %c0_20, %c0_21] : memref<5x28x144xbf16, #tpu.memory_space<vmem>>, vector<1x28x144xbf16>
    %24 = vector.shape_cast %23 : vector<1x28x144xbf16> to vector<28x144xbf16>
    %cst_22 = arith.constant dense<0.000000e+00> : vector<96x144xf32>
    %25 = tpu.matmul %22, %24, %cst_22 {dimension_numbers = #tpu.dot_dimension_numbers<[1], [0], [0], [1], [0, 0, 1, 1], [], []>} : vector<96x28xbf16>, vector<28x144xbf16>, vector<96x144xf32> -> vector<96x144xf32>
    %26 = arith.addf %19, %25 : vector<96x144xf32>
    %c0_23 = arith.constant 0 : index
    %c4 = arith.constant 4 : index
    %c0_24 = arith.constant 0 : index
    %27 = vector.load %arg0[%c0_23, %c4, %c0_24] : memref<4x28x28xf32, #tpu.memory_space<vmem>>, vector<4x24x28xf32>
    %28 = vector.shape_cast %27 : vector<4x24x28xf32> to vector<96x28xf32>
    %29 = arith.truncf %28 : vector<96x28xf32> to vector<96x28xbf16>
    %c4_25 = arith.constant 4 : index
    %c0_26 = arith.constant 0 : index
    %c0_27 = arith.constant 0 : index
    %30 = vector.load %arg2[%c4_25, %c0_26, %c0_27] : memref<5x28x144xbf16, #tpu.memory_space<vmem>>, vector<1x28x144xbf16>
    %31 = vector.shape_cast %30 : vector<1x28x144xbf16> to vector<28x144xbf16>
    %cst_28 = arith.constant dense<0.000000e+00> : vector<96x144xf32>
    %32 = tpu.matmul %29, %31, %cst_28 {dimension_numbers = #tpu.dot_dimension_numbers<[1], [0], [0], [1], [0, 0, 1, 1], [], []>} : vector<96x28xbf16>, vector<28x144xbf16>, vector<96x144xf32> -> vector<96x144xf32>
    %33 = arith.addf %26, %32 : vector<96x144xf32>
    %c0_29 = arith.constant 0 : index
    %c0_30 = arith.constant 0 : index
    %34 = vector.load %arg3[%c0_29, %c0_30] : memref<1x144xf32, #tpu.memory_space<vmem>>, vector<1x144xf32>
    %35 = vector.broadcast %34 : vector<1x144xf32> to vector<96x144xf32>
    %36 = arith.addf %33, %35 : vector<96x144xf32>
    %cst_31 = arith.constant 0.000000e+00 : f32
    %37 = vector.broadcast %cst_31 : f32 to vector<96x144xf32>
    %38 = arith.maximumf %36, %37 : vector<96x144xf32>
    %39 = vector.extract_strided_slice %38 {offsets = [0, 0], sizes = [96, 72], strides = [1, 1]} : vector<96x144xf32> to vector<96x72xf32>
    %40 = vector.extract_strided_slice %38 {offsets = [0, 72], sizes = [96, 72], strides = [1, 1]} : vector<96x144xf32> to vector<96x72xf32>
    %41 = arith.maximumf %39, %40 : vector<96x72xf32>
    %c0_32 = arith.constant 0 : index
    %c0_33 = arith.constant 0 : index
    %42 = vector.load %arg18[%c0_32, %c0_33] : memref<104x72xf32, #tpu.memory_space<vmem>>, vector<96x72xf32>
    tpu.vector_store %arg18[%c0_32, %c0_33], %41 {strides = array<i32>} : memref<104x72xf32, #tpu.memory_space<vmem>>, vector<96x72xf32>,
    %cst_34 = arith.constant 0.000000e+00 : f32
    %43 = vector.broadcast %cst_34 : f32 to vector<8x72xf32>
    %c96 = arith.constant 96 : index
    %c0_35 = arith.constant 0 : index
    %44 = vector.load %arg18[%c96, %c0_35] : memref<104x72xf32, #tpu.memory_space<vmem>>, vector<8x72xf32>
    tpu.vector_store %arg18[%c96, %c0_35], %43 {strides = array<i32>} : memref<104x72xf32, #tpu.memory_space<vmem>>, vector<8x72xf32>,
    %c1_36 = arith.constant 1 : index
    %c0_37 = arith.constant 0 : index
    %45 = vector.load %arg18[%c1_36, %c0_37] : memref<104x72xf32, #tpu.memory_space<vmem>>, vector<96x72xf32>
    %46 = arith.maximumf %41, %45 : vector<96x72xf32>
    %47 = vector.shape_cast %46 : vector<96x72xf32> to vector<4x24x72xf32>
    %48 = vector.extract_strided_slice %47 {offsets = [0, 0, 0], sizes = [4, 16, 72], strides = [1, 1, 1]} : vector<4x24x72xf32> to vector<4x16x72xf32>
    %49 = vector.shape_cast %48 : vector<4x16x72xf32> to vector<64x72xf32>
    %50 = arith.truncf %49 : vector<64x72xf32> to vector<64x72xbf16>
    %c0_38 = arith.constant 0 : index
    %c0_39 = arith.constant 0 : index
    %c0_40 = arith.constant 0 : index
    %51 = vector.load %arg4[%c0_38, %c0_39, %c0_40] : memref<5x72x128xbf16, #tpu.memory_space<vmem>>, vector<1x72x128xbf16>
    %52 = vector.shape_cast %51 : vector<1x72x128xbf16> to vector<72x128xbf16>
    %cst_41 = arith.constant dense<0.000000e+00> : vector<64x128xf32>
    %53 = tpu.matmul %50, %52, %cst_41 {dimension_numbers = #tpu.dot_dimension_numbers<[1], [0], [0], [1], [0, 0, 1, 1], [], []>} : vector<64x72xbf16>, vector<72x128xbf16>, vector<64x128xf32> -> vector<64x128xf32>
    %54 = vector.extract_strided_slice %47 {offsets = [0, 2, 0], sizes = [4, 16, 72], strides = [1, 1, 1]} : vector<4x24x72xf32> to vector<4x16x72xf32>
    %55 = vector.shape_cast %54 : vector<4x16x72xf32> to vector<64x72xf32>
    %56 = arith.truncf %55 : vector<64x72xf32> to vector<64x72xbf16>
    %c1_42 = arith.constant 1 : index
    %c0_43 = arith.constant 0 : index
    %c0_44 = arith.constant 0 : index
    %57 = vector.load %arg4[%c1_42, %c0_43, %c0_44] : memref<5x72x128xbf16, #tpu.memory_space<vmem>>, vector<1x72x128xbf16>
    %58 = vector.shape_cast %57 : vector<1x72x128xbf16> to vector<72x128xbf16>
    %cst_45 = arith.constant dense<0.000000e+00> : vector<64x128xf32>
    %59 = tpu.matmul %56, %58, %cst_45 {dimension_numbers = #tpu.dot_dimension_numbers<[1], [0], [0], [1], [0, 0, 1, 1], [], []>} : vector<64x72xbf16>, vector<72x128xbf16>, vector<64x128xf32> -> vector<64x128xf32>
    %60 = arith.addf %53, %59 : vector<64x128xf32>
    %61 = vector.extract_strided_slice %47 {offsets = [0, 4, 0], sizes = [4, 16, 72], strides = [1, 1, 1]} : vector<4x24x72xf32> to vector<4x16x72xf32>
    %62 = vector.shape_cast %61 : vector<4x16x72xf32> to vector<64x72xf32>
    %63 = arith.truncf %62 : vector<64x72xf32> to vector<64x72xbf16>
    %c2_46 = arith.constant 2 : index
    %c0_47 = arith.constant 0 : index
    %c0_48 = arith.constant 0 : index
    %64 = vector.load %arg4[%c2_46, %c0_47, %c0_48] : memref<5x72x128xbf16, #tpu.memory_space<vmem>>, vector<1x72x128xbf16>
    %65 = vector.shape_cast %64 : vector<1x72x128xbf16> to vector<72x128xbf16>
    %cst_49 = arith.constant dense<0.000000e+00> : vector<64x128xf32>
    %66 = tpu.matmul %63, %65, %cst_49 {dimension_numbers = #tpu.dot_dimension_numbers<[1], [0], [0], [1], [0, 0, 1, 1], [], []>} : vector<64x72xbf16>, vector<72x128xbf16>, vector<64x128xf32> -> vector<64x128xf32>
    %67 = arith.addf %60, %66 : vector<64x128xf32>
    %68 = vector.extract_strided_slice %47 {offsets = [0, 6, 0], sizes = [4, 16, 72], strides = [1, 1, 1]} : vector<4x24x72xf32> to vector<4x16x72xf32>
    %69 = vector.shape_cast %68 : vector<4x16x72xf32> to vector<64x72xf32>
    %70 = arith.truncf %69 : vector<64x72xf32> to vector<64x72xbf16>
    %c3_50 = arith.constant 3 : index
    %c0_51 = arith.constant 0 : index
    %c0_52 = arith.constant 0 : index
    %71 = vector.load %arg4[%c3_50, %c0_51, %c0_52] : memref<5x72x128xbf16, #tpu.memory_space<vmem>>, vector<1x72x128xbf16>
    %72 = vector.shape_cast %71 : vector<1x72x128xbf16> to vector<72x128xbf16>
    %cst_53 = arith.constant dense<0.000000e+00> : vector<64x128xf32>
    %73 = tpu.matmul %70, %72, %cst_53 {dimension_numbers = #tpu.dot_dimension_numbers<[1], [0], [0], [1], [0, 0, 1, 1], [], []>} : vector<64x72xbf16>, vector<72x128xbf16>, vector<64x128xf32> -> vector<64x128xf32>
    %74 = arith.addf %67, %73 : vector<64x128xf32>
    %75 = vector.extract_strided_slice %47 {offsets = [0, 8, 0], sizes = [4, 16, 72], strides = [1, 1, 1]} : vector<4x24x72xf32> to vector<4x16x72xf32>
    %76 = vector.shape_cast %75 : vector<4x16x72xf32> to vector<64x72xf32>
    %77 = arith.truncf %76 : vector<64x72xf32> to vector<64x72xbf16>
    %c4_54 = arith.constant 4 : index
    %c0_55 = arith.constant 0 : index
    %c0_56 = arith.constant 0 : index
    %78 = vector.load %arg4[%c4_54, %c0_55, %c0_56] : memref<5x72x128xbf16, #tpu.memory_space<vmem>>, vector<1x72x128xbf16>
    %79 = vector.shape_cast %78 : vector<1x72x128xbf16> to vector<72x128xbf16>
    %cst_57 = arith.constant dense<0.000000e+00> : vector<64x128xf32>
    %80 = tpu.matmul %77, %79, %cst_57 {dimension_numbers = #tpu.dot_dimension_numbers<[1], [0], [0], [1], [0, 0, 1, 1], [], []>} : vector<64x72xbf16>, vector<72x128xbf16>, vector<64x128xf32> -> vector<64x128xf32>
    %81 = arith.addf %74, %80 : vector<64x128xf32>
    %c0_58 = arith.constant 0 : index
    %c0_59 = arith.constant 0 : index
    %82 = vector.load %arg5[%c0_58, %c0_59] : memref<1x128xf32, #tpu.memory_space<vmem>>, vector<1x128xf32>
    %83 = vector.broadcast %82 : vector<1x128xf32> to vector<64x128xf32>
    %84 = arith.addf %81, %83 : vector<64x128xf32>
    %cst_60 = arith.constant 0.000000e+00 : f32
    %85 = vector.broadcast %cst_60 : f32 to vector<64x128xf32>
    %86 = arith.maximumf %84, %85 : vector<64x128xf32>
    %87 = vector.extract_strided_slice %86 {offsets = [0, 0], sizes = [64, 64], strides = [1, 1]} : vector<64x128xf32> to vector<64x64xf32>
    %88 = vector.extract_strided_slice %86 {offsets = [0, 64], sizes = [64, 64], strides = [1, 1]} : vector<64x128xf32> to vector<64x64xf32>
    %89 = arith.maximumf %87, %88 : vector<64x64xf32>
    %c0_61 = arith.constant 0 : index
    %c0_62 = arith.constant 0 : index
    %90 = vector.load %arg19[%c0_61, %c0_62] : memref<64x64xf32, #tpu.memory_space<vmem>>, vector<64x64xf32>
    tpu.vector_store %arg19[%c0_61, %c0_62], %89 {strides = array<i32>} : memref<64x64xf32, #tpu.memory_space<vmem>>, vector<64x64xf32>,
    %c0_63 = arith.constant 0 : index
    %c0_64 = arith.constant 0 : index
    %91 = tpu.strided_load %arg19[%c0_63, %c0_64] {strides = array<i32: 16, 1>} : memref<64x64xf32, #tpu.memory_space<vmem>>, vector<4x64xf32>
    %c2_65 = arith.constant 2 : index
    %c0_66 = arith.constant 0 : index
    %92 = tpu.strided_load %arg19[%c2_65, %c0_66] {strides = array<i32: 16, 1>} : memref<64x64xf32, #tpu.memory_space<vmem>>, vector<4x64xf32>
    %93 = arith.maximumf %91, %92 : vector<4x64xf32>
    %c0_67 = arith.constant 0 : index
    %c0_68 = arith.constant 0 : index
    %94 = vector.load %arg20[%c0_67, %c0_68] : memref<4x256xf32, #tpu.memory_space<vmem>>, vector<4x64xf32>
    tpu.vector_store %arg20[%c0_67, %c0_68], %93 {strides = array<i32>} : memref<4x256xf32, #tpu.memory_space<vmem>>, vector<4x64xf32>,
    %c4_69 = arith.constant 4 : index
    %c0_70 = arith.constant 0 : index
    %95 = tpu.strided_load %arg19[%c4_69, %c0_70] {strides = array<i32: 16, 1>} : memref<64x64xf32, #tpu.memory_space<vmem>>, vector<4x64xf32>
    %c6 = arith.constant 6 : index
    %c0_71 = arith.constant 0 : index
    %96 = tpu.strided_load %arg19[%c6, %c0_71] {strides = array<i32: 16, 1>} : memref<64x64xf32, #tpu.memory_space<vmem>>, vector<4x64xf32>
    %97 = arith.maximumf %95, %96 : vector<4x64xf32>
    %c0_72 = arith.constant 0 : index
    %c64 = arith.constant 64 : index
    %98 = vector.load %arg20[%c0_72, %c64] : memref<4x256xf32, #tpu.memory_space<vmem>>, vector<4x64xf32>
    tpu.vector_store %arg20[%c0_72, %c64], %97 {strides = array<i32>} : memref<4x256xf32, #tpu.memory_space<vmem>>, vector<4x64xf32>,
    %c8 = arith.constant 8 : index
    %c0_73 = arith.constant 0 : index
    %99 = tpu.strided_load %arg19[%c8, %c0_73] {strides = array<i32: 16, 1>} : memref<64x64xf32, #tpu.memory_space<vmem>>, vector<4x64xf32>
    %c10 = arith.constant 10 : index
    %c0_74 = arith.constant 0 : index
    %100 = tpu.strided_load %arg19[%c10, %c0_74] {strides = array<i32: 16, 1>} : memref<64x64xf32, #tpu.memory_space<vmem>>, vector<4x64xf32>
    %101 = arith.maximumf %99, %100 : vector<4x64xf32>
    %c0_75 = arith.constant 0 : index
    %c128 = arith.constant 128 : index
    %102 = vector.load %arg20[%c0_75, %c128] : memref<4x256xf32, #tpu.memory_space<vmem>>, vector<4x64xf32>
    tpu.vector_store %arg20[%c0_75, %c128], %101 {strides = array<i32>} : memref<4x256xf32, #tpu.memory_space<vmem>>, vector<4x64xf32>,
    %c12 = arith.constant 12 : index
    %c0_76 = arith.constant 0 : index
    %103 = tpu.strided_load %arg19[%c12, %c0_76] {strides = array<i32: 16, 1>} : memref<64x64xf32, #tpu.memory_space<vmem>>, vector<4x64xf32>
    %c14 = arith.constant 14 : index
    %c0_77 = arith.constant 0 : index
    %104 = tpu.strided_load %arg19[%c14, %c0_77] {strides = array<i32: 16, 1>} : memref<64x64xf32, #tpu.memory_space<vmem>>, vector<4x64xf32>
    %105 = arith.maximumf %103, %104 : vector<4x64xf32>
    %c0_78 = arith.constant 0 : index
    %c192 = arith.constant 192 : index
    %106 = vector.load %arg20[%c0_78, %c192] : memref<4x256xf32, #tpu.memory_space<vmem>>, vector<4x64xf32>
    tpu.vector_store %arg20[%c0_78, %c192], %105 {strides = array<i32>} : memref<4x256xf32, #tpu.memory_space<vmem>>, vector<4x64xf32>,
    %c0_79 = arith.constant 0 : index
    %c0_80 = arith.constant 0 : index
    %107 = vector.load %arg20[%c0_79, %c0_80] : memref<4x256xf32, #tpu.memory_space<vmem>>, vector<4x256xf32>
    %108 = arith.truncf %107 : vector<4x256xf32> to vector<4x256xbf16>
    %c0_81 = arith.constant 0 : index
    %c0_82 = arith.constant 0 : index
    %109 = vector.load %arg6[%c0_81, %c0_82] : memref<256x64xbf16, #tpu.memory_space<vmem>>, vector<256x64xbf16>
    %cst_83 = arith.constant dense<0.000000e+00> : vector<4x64xf32>
    %110 = tpu.matmul %108, %109, %cst_83 {dimension_numbers = #tpu.dot_dimension_numbers<[1], [0], [0], [1], [0, 0, 1, 1], [], []>} : vector<4x256xbf16>, vector<256x64xbf16>, vector<4x64xf32> -> vector<4x64xf32>
    %c0_84 = arith.constant 0 : index
    %c0_85 = arith.constant 0 : index
    %111 = vector.load %arg7[%c0_84, %c0_85] : memref<1x64xf32, #tpu.memory_space<vmem>>, vector<1x64xf32>
    %112 = vector.broadcast %111 : vector<1x64xf32> to vector<4x64xf32>
    %113 = arith.addf %110, %112 : vector<4x64xf32>
    %cst_86 = arith.constant 0.000000e+00 : f32
    %114 = vector.broadcast %cst_86 : f32 to vector<4x64xf32>
    %115 = arith.maximumf %113, %114 : vector<4x64xf32>
    %c0_87 = arith.constant 0 : index
    %c0_88 = arith.constant 0 : index
    %116 = vector.load %arg8[%c0_87, %c0_88] : memref<64x32xf32, #tpu.memory_space<vmem>>, vector<64x32xf32>
    %cst_89 = arith.constant dense<0.000000e+00> : vector<4x32xf32>
    %117 = tpu.matmul %115, %116, %cst_89 {dimension_numbers = #tpu.dot_dimension_numbers<[1], [0], [0], [1], [0, 0, 1, 1], [], []>} : vector<4x64xf32>, vector<64x32xf32>, vector<4x32xf32> -> vector<4x32xf32>
    %c0_90 = arith.constant 0 : index
    %c0_91 = arith.constant 0 : index
    %118 = vector.load %arg9[%c0_90, %c0_91] : memref<1x32xf32, #tpu.memory_space<vmem>>, vector<1x32xf32>
    %119 = vector.broadcast %118 : vector<1x32xf32> to vector<4x32xf32>
    %120 = arith.addf %117, %119 : vector<4x32xf32>
    %c0_92 = arith.constant 0 : index
    %c0_93 = arith.constant 0 : index
    %121 = vector.load %arg1[%c0_92, %c0_93] : memref<4x10xf32, #tpu.memory_space<vmem>>, vector<4x10xf32>
    %c0_94 = arith.constant 0 : index
    %c0_95 = arith.constant 0 : index
    %122 = vector.load %arg10[%c0_94, %c0_95] : memref<10x16xf32, #tpu.memory_space<vmem>>, vector<10x16xf32>
    %cst_96 = arith.constant dense<0.000000e+00> : vector<4x16xf32>
    %123 = tpu.matmul %121, %122, %cst_96 {dimension_numbers = #tpu.dot_dimension_numbers<[1], [0], [0], [1], [0, 0, 1, 1], [], []>} : vector<4x10xf32>, vector<10x16xf32>, vector<4x16xf32> -> vector<4x16xf32>
    %c0_97 = arith.constant 0 : index
    %c0_98 = arith.constant 0 : index
    %124 = vector.load %arg11[%c0_97, %c0_98] : memref<1x16xf32, #tpu.memory_space<vmem>>, vector<1x16xf32>
    %125 = vector.broadcast %124 : vector<1x16xf32> to vector<4x16xf32>
    %126 = arith.addf %123, %125 : vector<4x16xf32>
    %127 = arith.mulf %120, %120 : vector<4x32xf32>
    %cst_99 = arith.constant dense<0.000000e+00> : vector<4xf32>
    %128 = vector.multi_reduction <add>, %127, %cst_99 [1] : vector<4x32xf32> to vector<4xf32>
    %129 = vector.shape_cast %128 : vector<4xf32> to vector<4x1xf32>
    %130 = arith.mulf %126, %126 : vector<4x16xf32>
    %cst_100 = arith.constant dense<0.000000e+00> : vector<4xf32>
    %131 = vector.multi_reduction <add>, %130, %cst_100 [1] : vector<4x16xf32> to vector<4xf32>
    %132 = vector.shape_cast %131 : vector<4xf32> to vector<4x1xf32>
    %133 = arith.addf %129, %132 : vector<4x1xf32>
    %cst_101 = arith.constant 1.000000e-24 : f32
    %134 = vector.broadcast %cst_101 : f32 to vector<4x1xf32>
    %135 = arith.maximumf %133, %134 : vector<4x1xf32>
    %136 = math.rsqrt %135 : vector<4x1xf32>
    %137 = vector.broadcast %136 : vector<4x1xf32> to vector<4x32xf32>
    %138 = arith.mulf %120, %137 : vector<4x32xf32>
    %cst_102 = arith.constant 0.000000e+00 : f32
    %139 = vector.broadcast %cst_102 : f32 to vector<4x32xf32>
    %140 = arith.maximumf %138, %139 : vector<4x32xf32>
    %141 = vector.broadcast %136 : vector<4x1xf32> to vector<4x16xf32>
    %142 = arith.mulf %126, %141 : vector<4x16xf32>
    %cst_103 = arith.constant 0.000000e+00 : f32
    %143 = vector.broadcast %cst_103 : f32 to vector<4x16xf32>
    %144 = arith.maximumf %142, %143 : vector<4x16xf32>
    %c0_104 = arith.constant 0 : index
    %c0_105 = arith.constant 0 : index
    %145 = vector.load %arg12[%c0_104, %c0_105] : memref<32x8xf32, #tpu.memory_space<vmem>>, vector<32x8xf32>
    %cst_106 = arith.constant dense<0.000000e+00> : vector<4x8xf32>
    %146 = tpu.matmul %140, %145, %cst_106 {dimension_numbers = #tpu.dot_dimension_numbers<[1], [0], [0], [1], [0, 0, 1, 1], [], []>} : vector<4x32xf32>, vector<32x8xf32>, vector<4x8xf32> -> vector<4x8xf32>
    %c0_107 = arith.constant 0 : index
    %c0_108 = arith.constant 0 : index
    %147 = vector.load %arg13[%c0_107, %c0_108] : memref<16x8xf32, #tpu.memory_space<vmem>>, vector<16x8xf32>
    %cst_109 = arith.constant dense<0.000000e+00> : vector<4x8xf32>
    %148 = tpu.matmul %144, %147, %cst_109 {dimension_numbers = #tpu.dot_dimension_numbers<[1], [0], [0], [1], [0, 0, 1, 1], [], []>} : vector<4x16xf32>, vector<16x8xf32>, vector<4x8xf32> -> vector<4x8xf32>
    %149 = arith.addf %146, %148 : vector<4x8xf32>
    %c0_110 = arith.constant 0 : index
    %c0_111 = arith.constant 0 : index
    %150 = vector.load %arg14[%c0_110, %c0_111] : memref<1x8xf32, #tpu.memory_space<vmem>>, vector<1x8xf32>
    %151 = vector.broadcast %150 : vector<1x8xf32> to vector<4x8xf32>
    %152 = arith.addf %149, %151 : vector<4x8xf32>
    %cst_112 = arith.constant dense<0.000000e+00> : vector<8xf32>
    %153 = vector.multi_reduction <add>, %152, %cst_112 [0] : vector<4x8xf32> to vector<8xf32>
    %154 = vector.shape_cast %153 : vector<8xf32> to vector<1x8xf32>
    %cst_113 = arith.constant 4.000000e+00 : f32
    %155 = vector.broadcast %cst_113 : f32 to vector<1x8xf32>
    %156 = arith.divf %154, %155 : vector<1x8xf32>
    %c0_114 = arith.constant 0 : index
    %157 = memref.load %arg16[%c0_114] : memref<1xf32, #tpu.memory_space<smem>>
    %cst_115 = arith.constant 1.000000e+00 : f32
    %158 = arith.divf %cst_115, %157 : f32
    %c0_116 = arith.constant 0 : index
    %c0_117 = arith.constant 0 : index
    %159 = vector.load %arg15[%c0_116, %c0_117] : memref<2x8xf32, #tpu.memory_space<vmem>>, vector<2x8xf32>
    %cst_118 = arith.constant 0.000000e+00 : f32
    %160 = vector.broadcast %cst_118 : f32 to vector<1x8xf32>
    %161 = arith.subf %160, %156 : vector<1x8xf32>
    %162 = vector.extract_strided_slice %159 {offsets = [0, 0], sizes = [1, 8], strides = [1, 1]} : vector<2x8xf32> to vector<1x8xf32>
    %163 = arith.addf %161, %162 : vector<1x8xf32>
    %164 = vector.broadcast %158 : f32 to vector<1x8xf32>
    %165 = arith.mulf %163, %164 : vector<1x8xf32>
    %166 = vector.extract_strided_slice %159 {offsets = [1, 0], sizes = [1, 8], strides = [1, 1]} : vector<2x8xf32> to vector<1x8xf32>
    %167 = arith.addf %156, %166 : vector<1x8xf32>
    %168 = vector.broadcast %158 : f32 to vector<1x8xf32>
    %169 = arith.mulf %167, %168 : vector<1x8xf32>
    %170 = arith.cmpf ogt, %169, %165 : vector<1x8xf32>
    %171 = arith.extui %170 : vector<1x8xi1> to vector<1x8xi32>
    %172 = arith.sitofp %171 : vector<1x8xi32> to vector<1x8xf32>
    %cst_119 = arith.constant dense<0xFF800000> : vector<1xf32>
    %173 = vector.multi_reduction <maximumf>, %172, %cst_119 [1] : vector<1x8xf32> to vector<1xf32>
    %174 = vector.shape_cast %173 : vector<1xf32> to vector<1x1xf32>
    %175 = vector.broadcast %174 : vector<1x1xf32> to vector<1x8xf32>
    %176 = arith.subf %172, %175 : vector<1x8xf32>
    %177 = math.exp %176 : vector<1x8xf32>
    %cst_120 = arith.constant dense<0.000000e+00> : vector<1xf32>
    %178 = vector.multi_reduction <add>, %177, %cst_120 [1] : vector<1x8xf32> to vector<1xf32>
    %179 = vector.shape_cast %178 : vector<1xf32> to vector<1x1xf32>
    %180 = vector.broadcast %179 : vector<1x1xf32> to vector<1x8xf32>
    %181 = arith.divf %177, %180 : vector<1x8xf32>
    %c0_121 = arith.constant 0 : index
    %c0_122 = arith.constant 0 : index
    %182 = vector.load %arg17[%c0_121, %c0_122] : memref<1x8xf32, #tpu.memory_space<vmem>>, vector<1x8xf32>
    tpu.vector_store %arg17[%c0_121, %c0_122], %181 {strides = array<i32>} : memref<1x8xf32, #tpu.memory_space<vmem>>, vector<1x8xf32>,
    return
  }
}

</mosaic_0001>

<bundles_post_ra>
// kernel: policy_net_forward.1
= control target key start
LH: loop header
LB: loop body
LE: loop exit
PB: predicated region body
PF: predicated region fallthrough
CT: control target
= control target key end

     0   :  { %s4276_s0 = inlined_call_operand.vmem [shape: f32[4,28,28], index: 0, kind: input, shape index: {}]   ;;  %s4277_s1 = inlined_call_operand.vmem [shape: f32[4,10], index: 1, kind: input, shape index: {}]   ;;  %s4278_s2 = inlined_call_operand.vmem [shape: bf16[5,28,144], index: 2, kind: input, shape index: {}]   ;;  %s4279_s3 = inlined_call_operand.vmem [shape: f32[1,144], index: 3, kind: input, shape index: {}]   ;;  %s4280_s4 = inlined_call_operand.vmem [shape: bf16[5,72,128], index: 4, kind: input, shape index: {}]   ;;  %s4281_s5 = inlined_call_operand.vmem [shape: f32[1,128], index: 5, kind: input, shape index: {}]   ;;  %s4282_s6 = inlined_call_operand.vmem [shape: bf16[256,64], index: 6, kind: input, shape index: {}]   ;;  %s4283_s7 = inlined_call_operand.vmem [shape: f32[1,64], index: 7, kind: input, shape index: {}]   ;;  %s4284_s8 = inlined_call_operand.vmem [shape: f32[64,32], index: 8, kind: input, shape index: {}]   ;;  %s4285_s9 = inlined_call_operand.vmem [shape: f32[1,32], index: 9, kind: input, shape index: {}]   ;;  %s4286_s10 = inlined_call_operand.vmem [shape: f32[10,16], index: 10, kind: input, shape index: {}]   ;;  %s4287_s11 = inlined_call_operand.vmem [shape: f32[1,16], index: 11, kind: input, shape index: {}]   ;;  %s4288_s12 = inlined_call_operand.vmem [shape: f32[32,8], index: 12, kind: input, shape index: {}]   ;;  %s4289_s13 = inlined_call_operand.vmem [shape: f32[16,8], index: 13, kind: input, shape index: {}]   ;;  %s4290_s14 = inlined_call_operand.vmem [shape: f32[1,8], index: 14, kind: input, shape index: {}]   ;;  %s4291_s15 = inlined_call_operand.vmem [shape: f32[2,8], index: 15, kind: input, shape index: {}]   ;;  %s4292_s16 = inlined_call_operand.<no memory space> [shape: f32[1], index: 16, kind: input, shape index: {}]   ;;  %s4293_s17 = inlined_call_operand.hbm [shape: f32[1,8], index: 17, kind: output, shape index: {}]  }
   0x1   :  { %4295 = sst [smem:[#allocation9_spill]] %s4276_s0 }
   0x2   :  { %4296 = sst [smem:[#allocation10_spill]] %s4277_s1 }
   0x3   :  { %v3134_v0 = vld [vmem:[%s4278_s2 + $0x4] ss:$8 sps:$4 sm:$0xff]   ;;  %v3136_v1 = vld [vmem:[%s4278_s2] ss:$8 sps:$4 sm:$0xff]   ;;  %vm141_vm0 = vcmask 1045504   ;;  %v3238_v2 = vmov 0  }
   0x4   :  { %315 = vmatprep.mubr.bf16.mxu0 %v3238_v2  ;;  %180 = vmatprep.mubr.bf16.mxu1 %v3238_v2  ;;  %v3137_v3 = vld [vmem:[%s4278_s2 + $0x14] ss:$8 sps:$4 sm:$0x3f]   ;;  %v3139_v4 = vld [vmem:[%s4278_s2 + $0x10] ss:$8 sps:$4 sm:$0x3f]  }
   0x5   :  { %283 = vmatprep.subr.bf16.mxu0 %v3134_v0  ;;  %s4297_s1 = sld [smem:[#allocation9_spill]]  ;;  %v278_v7 = vsel %vm141_vm0, %v3139_v4, 0  ;;  %v3142_v8 = vld [vmem:[%s4278_s2 + $0x44] ss:$8 sps:$4 sm:$0xff]   ;;  %vm122_vm1 = vcmask 228352  }
   0x6   :  { %284 = vmatpush1.bf16.msra.mxu0 %v3136_v1  ;;  %v3140_v10 = vld [vmem:[%s4278_s2 + $0x40] ss:$8 sps:$4 sm:$0xff]   ;;  %v3143_v11 = vld [vmem:[%s4278_s2 + $0x54] ss:$8 sps:$4 sm:$0x3f]  }
   0x7   :  { %2585 = vmatprep.subr.msk.bf16.mxu0 %vm141_vm0, %v3137_v3  ;;  %v3145_v12 = vld [vmem:[%s4278_s2 + $0x50] ss:$8 sps:$4 sm:$0x3f]   ;;  %v3148_v16 = vld [vmem:[%s4278_s2 + $0x64] ss:$8 sps:$4 sm:$0xff]  }
   0x8   :  { %v436_v15 = vsel %vm141_vm0, %v3145_v12, 0  ;;  %v3158_v21 = vld [vmem:[%s4278_s2 + $0x24] ss:$8 sps:$4 sm:$0xff]   ;;  %v3160_v22 = vld [vmem:[%s4278_s2 + $0x20] ss:$8 sps:$4 sm:$0xff]  }
   0x9   :  { %148 = vmatprep.subr.bf16.mxu1 %v3158_v21  ;;  %v3161_v23 = vld [vmem:[%s4278_s2 + $0x34] ss:$8 sps:$4 sm:$0x3f]   ;;  %v3163_v24 = vld [vmem:[%s4278_s2 + $0x30] ss:$8 sps:$4 sm:$0x3f]  }
   0xa   :  { %286 = vmatpush1.bf16.msra.mxu0 %v278_v7  ;;  %149 = vmatpush1.bf16.msra.mxu1 %v3160_v22  ;;  %v143_v29 = vsel %vm141_vm0, %v3163_v24, 0  ;;  %v3146_v48 = vld [vmem:[%s4278_s2 + $0x60] ss:$8 sps:$4 sm:$0xff]   ;;  %v3149_v51 = vld [vmem:[%s4278_s2 + $0x74] ss:$8 sps:$4 sm:$0x3f]  }
   0xb   :  { %v59_v5 = vld [vmem:[%s4297_s1] sm:$0xff]  ;;  %v60_v6 = vld [vmem:[%s4297_s1 + $0x8] sm:$0xff]  ;;  %441 = vmatprep.subr.bf16.mxu0 %v3142_v8  ;;  %v61_v13 = vld [vmem:[%s4297_s1 + $0x10] sm:$0xff]  ;;  %2574 = vmatprep.subr.msk.bf16.mxu1 %vm141_vm0, %v3161_v23 }
   0xc   :  { %v71_v9 = vpack.c.bf16 %v60_v6, %v59_v5  ;;  %v62_v14 = vld [vmem:[%s4297_s1 + $0x20] sm:$0xff]  ;;  %v63_v18 = vld [vmem:[%s4297_s1 + $0x28] sm:$0xff]  ;;  %v64_v19 = vld [vmem:[%s4297_s1 + $0x30] sm:$0xff] }
   0xd   :  { %v72_v17 = vpack.c.bf16 %v62_v14, %v61_v13  ;;  %v73_v20 = vpack.c.bf16 %v64_v19, %v63_v18  ;;  %v81_v25 = vld [vmem:[%s4297_s1 + $0x1] sm:$0xff]  ;;  %v82_v26 = vld [vmem:[%s4297_s1 + $0x9] sm:$0xff]  ;;  %v83_v32 = vld [vmem:[%s4297_s1 + $0x11] sm:$0xff] }
   0xe   :  { %2586 = vmatmul.mubr.msk.bf16.vlgmr.msra.gmra.mrb[0].mxu0 %vm122_vm1, %v71_v9  ;;  %v65_v27 = vld [vmem:[%s4297_s1 + $0x40] sm:$0xff]  ;;  %v66_v28 = vld [vmem:[%s4297_s1 + $0x48] sm:$0xff]  ;;  %v93_v30 = vpack.c.bf16 %v82_v26, %v81_v25  ;;  %151 = vmatpush1.bf16.msra.mxu1 %v143_v29  ;;  %v67_v34 = vld [vmem:[%s4297_s1 + $0x50] sm:$0xff] }
   0xf   :  { %442 = vmatpush1.bf16.msra.mxu0 %v3140_v10  ;;  %325 = vmatprep.mubr.bf16.mxu0 %v3238_v2  ;;  %v74_v31 = vpack.c.bf16 %v66_v28, %v65_v27  ;;  %v84_v33 = vld [vmem:[%s4297_s1 + $0x21] sm:$0xff]  ;;  %v85_v38 = vld [vmem:[%s4297_s1 + $0x29] sm:$0xff]  ;;  %v86_v39 = vld [vmem:[%s4297_s1 + $0x31] sm:$0xff] }
  0x10   :  { %2600 = vmatprep.subr.msk.bf16.mxu0 %vm141_vm0, %v3143_v11  ;;  %v68_v35 = vld [vmem:[%s4297_s1 + $0x60] sm:$0xff]  ;;  %v94_v36 = vpack.c.bf16 %v84_v33, %v83_v32  ;;  %v69_v40 = vld [vmem:[%s4297_s1 + $0x68] sm:$0xff]  ;;  %v70_v41 = vld [vmem:[%s4297_s1 + $0x70] sm:$0xff]  ;;  %v95_v42 = vpack.c.bf16 %v86_v39, %v85_v38 }
  0x11   :  { %2575 = vmatmul.mubr.msk.bf16.vlgmr.msra.gmra.mrb[0].mxu1 %vm122_vm1, %v93_v30  ;;  %v75_v37 = vpack.c.bf16 %v68_v35, %v67_v34  ;;  %v76_v43 = vpack.c.bf16 %v70_v41, %v69_v40  ;;  %v87_v44 = vld [vmem:[%s4297_s1 + $0x41] sm:$0xff]  ;;  %v88_v45 = vld [vmem:[%s4297_s1 + $0x49] sm:$0xff]  ;;  %v89_v53 = vld [vmem:[%s4297_s1 + $0x51] sm:$0xff] }
  0x12   :  { %190 = vmatprep.mubr.bf16.mxu1 %v3238_v2  ;;  %v376_v46 = vld [vmem:[%s4297_s1 + $0x2] sm:$0xff]  ;;  %v377_v47 = vld [vmem:[%s4297_s1 + $0xa] sm:$0xff]  ;;  %v96_v49 = vpack.c.bf16 %v88_v45, %v87_v44  ;;  %v378_v55 = vld [vmem:[%s4297_s1 + $0x12] sm:$0xff] }
  0x13   :  { %444 = vmatpush1.bf16.msra.mxu0 %v436_v15  ;;  %v388_v50 = vpack.c.bf16 %v377_v47, %v376_v46  ;;  %v3151_v52 = vld [vmem:[%s4278_s2 + $0x70] ss:$8 sps:$4 sm:$0x3f]   ;;  %v90_v54 = vld [vmem:[%s4297_s1 + $0x61] sm:$0xff] }
  0x14   :  { %623 = vmatprep.subr.bf16.mxu0 %v3148_v16  ;;  %v379_v56 = vld [vmem:[%s4297_s1 + $0x22] sm:$0xff] }
  0x16   :  { %2587 = vmatmul.mubr.msk.bf16.gmra.mrb[4].mxu0 %vm122_vm1, %v72_v17 }
  0x17   :  { %335 = vmatprep.mubr.bf16.mxu0 %v3238_v2 }
  0x19   :  { %2576 = vmatmul.mubr.msk.bf16.gmra.mrb[4].mxu1 %vm122_vm1, %v94_v36 }
  0x1a   :  { %200 = vmatprep.mubr.bf16.mxu1 %v3238_v2 }
  0x1e   :  { %2588 = vmatmul.mubr.msk.bf16.gmra.mrb[8].mxu0 %vm122_vm1, %v73_v20 }
  0x1f   :  { %345 = vmatprep.mubr.bf16.mxu0 %v3238_v2 }
  0x21   :  { %2577 = vmatmul.mubr.msk.bf16.gmra.mrb[8].mxu1 %vm122_vm1, %v95_v42 }
  0x22   :  { %210 = vmatprep.mubr.bf16.mxu1 %v3238_v2 }
  0x26   :  { %2589 = vmatmul.mubr.msk.bf16.gmra.mrb[12].mxu0 %vm122_vm1, %v74_v31 }
  0x27   :  { %355 = vmatprep.mubr.bf16.mxu0 %v3238_v2 }
  0x29   :  { %2578 = vmatmul.mubr.msk.bf16.gmra.mrb[12].mxu1 %vm122_vm1, %v96_v49 }
  0x2a   :  { %220 = vmatprep.mubr.bf16.mxu1 %v3238_v2 }
  0x2e   :  { %2590 = vmatmul.mubr.msk.bf16.gmra.mrb[16].mxu0 %vm122_vm1, %v75_v37 }
  0x2f   :  { %365 = vmatprep.mubr.bf16.mxu0 %v3238_v2 }
  0x36   :  { %2591 = vmatmul.mubr.msk.bf16.gmra.mrb[20].mxu0 %vm122_vm1, %v76_v43 }
  0x37   :  { %473 = vmatprep.mubr.bf16.mxu0 %v3238_v2 }
  0x3e   :  { %2601 = vmatmul.mubr.msk.bf16.vlgmr.msra.gmra.mrb[0].mxu0 %vm122_vm1, %v388_v50 }
  0x3f   :  { %624 = vmatpush1.bf16.msra.mxu0 %v3146_v48  ;;  %483 = vmatprep.mubr.bf16.mxu0 %v3238_v2 }
  0x40   :  { %23 = vsyncpa [#allocation7], 0  ;;  %2615 = vmatprep.subr.msk.bf16.mxu0 %vm141_vm0, %v3149_v51  ;;  %v618_v57 = vsel %vm141_vm0, %v3151_v52, 0  ;;  %v3154_v58 = vld [vmem:[%s4278_s2 + $0x84] ss:$8 sps:$4 sm:$0xff]   ;;  %v97_v59 = vpack.c.bf16 %v90_v54, %v89_v53  ;;  %v389_v60 = vpack.c.bf16 %v379_v56, %v378_v55  ;;  %v92_v62 = vld [vmem:[%s4297_s1 + $0x71] sm:$0xff] }
  0x41   :  { %v91_v61 = vld [vmem:[%s4297_s1 + $0x69] sm:$0xff]  ;;  %v381_v0 = vld [vmem:[%s4297_s1 + $0x32] sm:$0xff]  ;;  %vm1235_vm2 = vcmask 1043456   ;;  %vm1091_vm3 = vcmask 588800   ;;  %vm1054_vm4 = vcmask 457728   ;;  %vm1568_vm5 = vcmask 1041408  }
  0x42   :  { %2579 = vmatmul.mubr.msk.bf16.gmra.mrb[16].mxu1 %vm122_vm1, %v97_v59  ;;  %v380_v63 = vld [vmem:[%s4297_s1 + $0x2a] sm:$0xff]  ;;  %v98_v1 = vpack.c.bf16 %v92_v62, %v91_v61  ;;  %v382_v4 = vld [vmem:[%s4297_s1 + $0x42] sm:$0xff]  ;;  %v384_v7 = vld [vmem:[%s4297_s1 + $0x52] sm:$0xff]  ;;  %s3241_s29 = smov 64   ;;  %vm1918_vm6 = vcmask 523264   ;;  %vm1935_vm7 = vcmask 519168  }
  0x43   :  { %626 = vmatpush1.bf16.msra.mxu0 %v618_v57  ;;  %230 = vmatprep.mubr.bf16.mxu1 %v3238_v2  ;;  %v390_v3 = vpack.c.bf16 %v381_v0, %v380_v63  ;;  %v383_v5 = vld [vmem:[%s4297_s1 + $0x4a] sm:$0xff]  ;;  %v385_v8 = vld [vmem:[%s4297_s1 + $0x62] sm:$0xff]  ;;  %v387_v11 = vld [vmem:[%s4297_s1 + $0x72] sm:$0xff]  ;;  %vm1950_vm8 = vcmask 1043968   ;;  %vm3243_vm9 = vmmov 0   ;;  %vm3244_vm10 = vmmov 1  }
  0x44   :  { %805 = vmatprep.subr.bf16.mxu0 %v3154_v58  ;;  %v391_v6 = vpack.c.bf16 %v383_v5, %v382_v4  ;;  %v392_v9 = vpack.c.bf16 %v385_v8, %v384_v7  ;;  %v386_v10 = vld [vmem:[%s4297_s1 + $0x6a] sm:$0xff]  ;;  %v3155_v17 = vld [vmem:[%s4278_s2 + $0x94] ss:$8 sps:$4 sm:$0x3f]   ;;  %vm2980_vm11 = vmpackc.low %vm1568_vm5, %vm3244_vm10  ;;  %s4298_s27 = sld [smem:[#allocation10_spill]]  ;;  %vm2256_vm12 = vcmask 80896  }
  0x45   :  { %v393_v12 = vpack.c.bf16 %v387_v11, %v386_v10  ;;  %v558_v13 = vld [vmem:[%s4297_s1 + $0x3] sm:$0xff]  ;;  %v559_v14 = vld [vmem:[%s4297_s1 + $0xb] sm:$0xff]  ;;  %v560_v19 = vld [vmem:[%s4297_s1 + $0x13] sm:$0xff]  ;;  %vm2334_vm13 = vcmask 257024   ;;  %vm2339_vm14 = vcmask 125952   ;;  %vm2356_vm15 = vcmask 130048  }
  0x46   :  { %2602 = vmatmul.mubr.msk.bf16.gmra.mrb[4].mxu0 %vm122_vm1, %v389_v60  ;;  %v570_v15 = vpack.c.bf16 %v559_v14, %v558_v13  ;;  %v3152_v16 = vld [vmem:[%s4278_s2 + $0x80] ss:$8 sps:$4 sm:$0xff]   ;;  %v3157_v18 = vld [vmem:[%s4278_s2 + $0x90] ss:$8 sps:$4 sm:$0x3f]   ;;  %v924_v13 = vlaneseq }
  0x47   :  { %493 = vmatprep.mubr.bf16.mxu0 %v3238_v2  ;;  %v561_v20 = vld [vmem:[%s4297_s1 + $0x23] sm:$0xff]  ;;  %v800_v21 = vsel %vm141_vm0, %v3157_v18, 0  ;;  %v562_v23 = vld [vmem:[%s4297_s1 + $0x2b] sm:$0xff]  ;;  %v563_v24 = vld [vmem:[%s4297_s1 + $0x33] sm:$0xff] }
  0x48   :  { %v571_v22 = vpack.c.bf16 %v561_v20, %v560_v19  ;;  %v572_v25 = vpack.c.bf16 %v563_v24, %v562_v23  ;;  %v564_v26 = vld [vmem:[%s4297_s1 + $0x43] sm:$0xff]  ;;  %v565_v27 = vld [vmem:[%s4297_s1 + $0x4b] sm:$0xff]  ;;  %v566_v29 = vld [vmem:[%s4297_s1 + $0x53] sm:$0xff]  ;;  %v925_v14 = vshrl.u32 %v924_v13, 7 }
  0x49   :  { %v573_v28 = vpack.c.bf16 %v565_v27, %v564_v26  ;;  %v567_v30 = vld [vmem:[%s4297_s1 + $0x63] sm:$0xff]  ;;  %v568_v32 = vld [vmem:[%s4297_s1 + $0x6b] sm:$0xff]  ;;  %v569_v33 = vld [vmem:[%s4297_s1 + $0x73] sm:$0xff] }
  0x4a   :  { %2580 = vmatmul.mubr.msk.bf16.gmra.mrb[20].mxu1 %vm122_vm1, %v98_v1  ;;  %v574_v31 = vpack.c.bf16 %v567_v30, %v566_v29  ;;  %v575_v34 = vpack.c.bf16 %v569_v33, %v568_v32  ;;  %v740_v35 = vld [vmem:[%s4297_s1 + $0x4] sm:$0xff]  ;;  %v741_v36 = vld [vmem:[%s4297_s1 + $0xc] sm:$0xff]  ;;  %v742_v38 = vld [vmem:[%s4297_s1 + $0x14] sm:$0xff] }
  0x4b   :  { %v752_v37 = vpack.c.bf16 %v741_v36, %v740_v35  ;;  %v743_v39 = vld [vmem:[%s4297_s1 + $0x24] sm:$0xff]  ;;  %v744_v41 = vld [vmem:[%s4297_s1 + $0x2c] sm:$0xff]  ;;  %v745_v42 = vld [vmem:[%s4297_s1 + $0x34] sm:$0xff] }
  0x4c   :  { %v753_v40 = vpack.c.bf16 %v743_v39, %v742_v38  ;;  %v754_v43 = vpack.c.bf16 %v745_v42, %v744_v41  ;;  %v746_v44 = vld [vmem:[%s4297_s1 + $0x44] sm:$0xff]  ;;  %v747_v45 = vld [vmem:[%s4297_s1 + $0x4c] sm:$0xff]  ;;  %v748_v47 = vld [vmem:[%s4297_s1 + $0x54] sm:$0xff] }
  0x4d   :  { %v755_v46 = vpack.c.bf16 %v747_v45, %v746_v44  ;;  %v749_v48 = vld [vmem:[%s4297_s1 + $0x64] sm:$0xff]  ;;  %v750_v50 = vld [vmem:[%s4297_s1 + $0x6c] sm:$0xff]  ;;  %v751_v51 = vld [vmem:[%s4297_s1 + $0x74] sm:$0xff] }
  0x4e   :  { %2603 = vmatmul.mubr.msk.bf16.gmra.mrb[8].mxu0 %vm122_vm1, %v390_v3  ;;  %v756_v49 = vpack.c.bf16 %v749_v48, %v748_v47  ;;  %v757_v52 = vpack.c.bf16 %v751_v51, %v750_v50  ;;  %v3164_v23 = vld [vmem:[%s4280_s4 + $0x24] sm:$0xff]   ;;  %v3165_v45 = vld [vmem:[%s4280_s4 + $0x2c] sm:$0xff]  }
  0x4f   :  { %503 = vmatprep.mubr.bf16.mxu0 %v3238_v2  ;;  %2832 = vmatprep.subr.bf16.mxu1 %v3164_v23 }
  0x50   :  { %2833 = vmatpush3.bf16.msra.mxu1 %v3164_v23 }
  0x51   :  { %2834 = vmatprep.subr.bf16.mxu1 %v3165_v45 }
  0x54   :  { %2835 = vmatpush3.bf16.msra.mxu1 %v3165_v45 }
  0x56   :  { %2604 = vmatmul.mubr.msk.bf16.gmra.mrb[12].mxu0 %vm122_vm1, %v391_v6 }
  0x57   :  { %513 = vmatprep.mubr.bf16.mxu0 %v3238_v2 }
  0x5e   :  { %2605 = vmatmul.mubr.msk.bf16.gmra.mrb[16].mxu0 %vm122_vm1, %v392_v9 }
  0x5f   :  { %523 = vmatprep.mubr.bf16.mxu0 %v3238_v2 }
  0x66   :  { %2606 = vmatmul.mubr.msk.bf16.gmra.mrb[20].mxu0 %vm122_vm1, %v393_v12 }
  0x67   :  { %655 = vmatprep.mubr.bf16.mxu0 %v3238_v2 }
  0x6e   :  { %2616 = vmatmul.mubr.msk.bf16.vlgmr.msra.gmra.mrb[0].mxu0 %vm122_vm1, %v570_v15  ;;  %v926_v15 = vsub.s32 0, %v925_v14 }
  0x6f   :  { %806 = vmatpush1.bf16.msra.mxu0 %v3152_v16  ;;  %665 = vmatprep.mubr.bf16.mxu0 %v3238_v2  ;;  %v922_v16 = vld [vmem:[%s4279_s3] sm:$0x3]  ;;  %s3239_s3 = smov 56  }
  0x70   :  { %2630 = vmatprep.subr.msk.bf16.mxu0 %vm141_vm0, %v3155_v17  ;;  %v930_v17 = vsub.s32 1, %v925_v14  ;;  %v3681_v18 = vrot.slane %v922_v16, %v926_v15 }
  0x73   :  { %808 = vmatpush1.bf16.msra.mxu0 %v800_v21 }
  0x76   :  { %2617 = vmatmul.mubr.msk.bf16.gmra.mrb[4].mxu0 %vm122_vm1, %v571_v22  ;;  %v3683_v22 = vrot.slane %v922_v16, %v930_v17 }
  0x77   :  { %675 = vmatprep.mubr.bf16.mxu0 %v3238_v2 }
  0x7e   :  { %2618 = vmatmul.mubr.msk.bf16.gmra.mrb[8].mxu0 %vm122_vm1, %v572_v25 }
  0x7f   :  { %685 = vmatprep.mubr.bf16.mxu0 %v3238_v2 }
  0x86   :  { %2619 = vmatmul.mubr.msk.bf16.gmra.mrb[12].mxu0 %vm122_vm1, %v573_v28 }
  0x87   :  { %695 = vmatprep.mubr.bf16.mxu0 %v3238_v2 }
  0x8e   :  { %2620 = vmatmul.mubr.msk.bf16.gmra.mrb[16].mxu0 %vm122_vm1, %v574_v31 }
  0x8f   :  { %705 = vmatprep.mubr.bf16.mxu0 %v3238_v2 }
  0x96   :  { %2621 = vmatmul.mubr.msk.bf16.gmra.mrb[20].mxu0 %vm122_vm1, %v575_v34 }
  0x97   :  { %837 = vmatprep.mubr.bf16.mxu0 %v3238_v2 }
  0x9e   :  { %2631 = vmatmul.mubr.msk.bf16.vlgmr.msra.gmra.mrb[0].mxu0 %vm122_vm1, %v752_v37 }
  0x9f   :  { %847 = vmatprep.mubr.bf16.mxu0 %v3238_v2 }
  0xa6   :  { %2632 = vmatmul.mubr.msk.bf16.gmra.mrb[4].mxu0 %vm122_vm1, %v753_v40 }
  0xa7   :  { %857 = vmatprep.mubr.bf16.mxu0 %v3238_v2 }
  0xae   :  { %2633 = vmatmul.mubr.msk.bf16.gmra.mrb[8].mxu0 %vm122_vm1, %v754_v43 }
  0xaf   :  { %867 = vmatprep.mubr.bf16.mxu0 %v3238_v2 }
  0xb6   :  { %2634 = vmatmul.mubr.msk.bf16.gmra.mrb[12].mxu0 %vm122_vm1, %v755_v46 }
  0xb7   :  { %877 = vmatprep.mubr.bf16.mxu0 %v3238_v2 }
  0xbe   :  { %2635 = vmatmul.mubr.msk.bf16.gmra.mrb[16].mxu0 %vm122_vm1, %v756_v49 }
  0xbf   :  { %887 = vmatprep.mubr.bf16.mxu0 %v3238_v2 }
  0xc6   :  { %2636 = vmatmul.mubr.msk.bf16.gmra.mrb[20].mxu0 %vm122_vm1, %v757_v52  ;;  %vm2512_vm1 = vcmask 60416  }
  0xe4   :  { %v182_v53 = vpop.f32.mrb[0].mxu1 }
  0xe5   :  { %v184_v54 = vpop.f32.mrb[1].mxu1 }
  0xe6   :  { %v186_v55 = vpop.f32.mrb[2].mxu1 }
  0xe7   :  { %v188_v56 = vpop.f32.mrb[3].mxu1 }
  0xec   :  { %v192_v57 = vpop.f32.mrb[4].mxu1 }
  0xed   :  { %v194_v58 = vpop.f32.mrb[5].mxu1 }
  0xee   :  { %v196_v59 = vpop.f32.mrb[6].mxu1 }
  0xef   :  { %v198_v60 = vpop.f32.mrb[7].mxu1 }
  0xf4   :  { %v3646_v2 = vpop.f32.mrb[8].mxu1 }
  0xf5   :  { %v3648_v61 = vpop.f32.mrb[9].mxu1 }
  0xf6   :  { %v3650_v62 = vpop.f32.mrb[10].mxu1 }
  0xf7   :  { %v3652_v63 = vpop.f32.mrb[11].mxu1 }
  0xfc   :  { %v3654_v0 = vpop.f32.mrb[12].mxu1 }
  0xfd   :  { %v3656_v1 = vpop.f32.mrb[13].mxu1 }
  0xfe   :  { %v3658_v3 = vpop.f32.mrb[14].mxu1 }
  0xff   :  { %v3660_v4 = vpop.f32.mrb[15].mxu1 }
 0x115   :  { %v3662_v5 = vpop.f32.mrb[16].mxu1 }
 0x116   :  { %v3664_v6 = vpop.f32.mrb[17].mxu1 }
 0x117   :  { %v3666_v7 = vpop.f32.mrb[18].mxu1 }
 0x118   :  { %v3668_v8 = vpop.f32.mrb[19].mxu1 }
 0x11d   :  { %v3670_v9 = vpop.f32.mrb[20].mxu1 }
 0x11e   :  { %v3672_v10 = vpop.f32.mrb[21].mxu1 }
 0x11f   :  { %v3674_v11 = vpop.f32.mrb[22].mxu1 }
 0x120   :  { %v3676_v12 = vpop.f32.mrb[23].mxu1 }
 0x171   :  { %v839_v19 = vpop.f32.mrb[0].mxu0 }
 0x172   :  { %v2991_v20 = vadd.f32 %v839_v19, %v182_v53  ;;  %v841_v21 = vpop.f32.mrb[1].mxu0 }
 0x173   :  { %v2992_v24 = vadd.f32 %v841_v21, %v184_v54  ;;  %v843_v25 = vpop.f32.mrb[2].mxu0 }
 0x174   :  { %v2993_v26 = vadd.f32 %v843_v25, %v186_v55  ;;  %v845_v27 = vpop.f32.mrb[3].mxu0  ;;  %v3689_v28 = vadd.f32 %v2991_v20, %v3681_v18 }
 0x175   :  { %v2994_v29 = vadd.f32 %v845_v27, %v188_v56  ;;  %v935_v30 = vadd.f32 %v2992_v24, %v3683_v22 }
 0x176   :  { %v958_v31 = vmax.f32 %v3689_v28, 0.0  ;;  %v3694_v32 = vadd.f32 %v2993_v26, %v3681_v18 }
 0x177   :  { %v937_v33 = vadd.f32 %v2994_v29, %v3683_v22  ;;  %v959_v36 = vmax.f32 %v935_v30, 0.0 }
 0x178   :  { %1006 = vrot.lane.b32.xlu0 %v958_v31, %s3239_s3  ;;  %v960_v34 = vmax.f32 %v3694_v32, 0.0 }
 0x179   :  { %v849_v35 = vpop.f32.mrb[4].mxu0  ;;  %v961_v41 = vmax.f32 %v937_v33, 0.0 }
 0x17a   :  { %v2995_v37 = vadd.f32 %v849_v35, %v192_v57  ;;  %1010 = vrot.lane.b32.xlu1 %v960_v34, %s3239_s3  ;;  %v851_v38 = vpop.f32.mrb[5].mxu0 }
 0x17b   :  { %v2996_v39 = vadd.f32 %v851_v38, %v194_v58  ;;  %v853_v40 = vpop.f32.mrb[6].mxu0 }
 0x17c   :  { %v3705_v42 = vadd.f32 %v2995_v37, %v3681_v18  ;;  %v2997_v43 = vadd.f32 %v853_v40, %v196_v59  ;;  %1008 = vrot.lane.b32.xlu0 %v959_v36, %s3239_s3  ;;  %v855_v44 = vpop.f32.mrb[7].mxu0 }
 0x17d   :  { %v939_v46 = vadd.f32 %v2996_v39, %v3683_v22  ;;  %v2998_v47 = vadd.f32 %v855_v44, %v198_v60 }
 0x17e   :  { %v962_v48 = vmax.f32 %v3705_v42, 0.0  ;;  %v3714_v49 = vadd.f32 %v2997_v43, %v3681_v18  ;;  %1012 = vrot.lane.b32.xlu1 %v961_v41, %s3239_s3 }
 0x17f   :  { %v963_v50 = vmax.f32 %v939_v46, 0.0  ;;  %v941_v51 = vadd.f32 %v2998_v47, %v3683_v22 }
 0x180   :  { %1014 = vrot.lane.b32.xlu0 %v962_v48, %s3239_s3  ;;  %v964_v53 = vmax.f32 %v3714_v49, 0.0 }
 0x181   :  { %v859_v52 = vpop.f32.mrb[8].mxu0  ;;  %v965_v58 = vmax.f32 %v941_v51, 0.0 }
 0x182   :  { %v2999_v54 = vadd.f32 %v859_v52, %v3646_v2  ;;  %1016 = vrot.lane.b32.xlu1 %v963_v50, %s3239_s3  ;;  %v861_v55 = vpop.f32.mrb[9].mxu0  ;;  %v3166_v2 = vld [vmem:[%s4280_s4 + $0x34] sm:$0xff]  }
 0x183   :  { %v3000_v56 = vadd.f32 %v861_v55, %v3648_v61  ;;  %v863_v57 = vpop.f32.mrb[10].mxu0  ;;  %2836 = vmatprep.subr.bf16.mxu1 %v3166_v2 }
 0x184   :  { %v3726_v59 = vadd.f32 %v2999_v54, %v3681_v18  ;;  %v3001_v60 = vadd.f32 %v863_v57, %v3650_v62  ;;  %1018 = vrot.lane.b32.xlu0 %v964_v53, %s3239_s3  ;;  %v865_v13 = vpop.f32.mrb[11].mxu0  ;;  %2837 = vmatpush3.bf16.msra.mxu1 %v3166_v2 }
 0x185   :  { %v943_v14 = vadd.f32 %v3000_v56, %v3683_v22  ;;  %v3002_v61 = vadd.f32 %v865_v13, %v3652_v63  ;;  %v3240_v56 = vmov 0.0  }
 0x186   :  { %v966_v15 = vmax.f32 %v3726_v59, 0.0  ;;  %v3739_v16 = vadd.f32 %v3001_v60, %v3681_v18  ;;  %1020 = vrot.lane.b32.xlu1 %v965_v58, %s3239_s3  ;;  %1104 = vst.msk [vmem:[#allocation2 + $0x60] sm:$0xff] %vm1091_vm3, %v3240_v56 }
 0x187   :  { %v967_v62 = vmax.f32 %v943_v14, 0.0  ;;  %v945_v17 = vadd.f32 %v3002_v61, %v3683_v22 }
 0x188   :  { %1022 = vrot.lane.b32.xlu0 %v966_v15, %s3239_s3  ;;  %v968_v20 = vmax.f32 %v3739_v16, 0.0 }
 0x189   :  { %v869_v19 = vpop.f32.mrb[12].mxu0  ;;  %v969_v25 = vmax.f32 %v945_v17, 0.0 }
 0x18a   :  { %v3003_v63 = vadd.f32 %v869_v19, %v3654_v0  ;;  %1024 = vrot.lane.b32.xlu1 %v967_v62, %s3239_s3  ;;  %v871_v21 = vpop.f32.mrb[13].mxu0  ;;  %v3167_v0 = vld [vmem:[%s4280_s4 + $0x3c] sm:$0xff]  }
 0x18b   :  { %v3004_v23 = vadd.f32 %v871_v21, %v3656_v1  ;;  %v873_v24 = vpop.f32.mrb[14].mxu0  ;;  %2838 = vmatprep.subr.bf16.mxu1 %v3167_v0 }
 0x18c   :  { %v3751_v26 = vadd.f32 %v3003_v63, %v3681_v18  ;;  %v3005_v27 = vadd.f32 %v873_v24, %v3658_v3  ;;  %1026 = vrot.lane.b32.xlu0 %v968_v20, %s3239_s3  ;;  %v875_v29 = vpop.f32.mrb[15].mxu0  ;;  %2839 = vmatpush3.bf16.msra.mxu1 %v3167_v0 }
 0x18d   :  { %v947_v30 = vadd.f32 %v3004_v23, %v3683_v22  ;;  %v3006_v1 = vadd.f32 %v875_v29, %v3660_v4  ;;  %v3168_v4 = vld [vmem:[%s4280_s4 + $0x44] ss:$0 sps:$4 sm:$0xff]  }
 0x18e   :  { %v970_v33 = vmax.f32 %v3751_v26, 0.0  ;;  %v3764_v35 = vadd.f32 %v3005_v27, %v3681_v18  ;;  %1028 = vrot.lane.b32.xlu1 %v969_v25, %s3239_s3  ;;  %3119 = vmatprep.subr.msk.bf16.mxu1 %vm1235_vm2, %v3168_v4  ;;  %v1237_v44 = vsel %vm1235_vm2, %v3168_v4, 0 }
 0x18f   :  { %v971_v3 = vmax.f32 %v947_v30, 0.0  ;;  %v949_v36 = vadd.f32 %v3006_v1, %v3683_v22 }
 0x190   :  { %1030 = vrot.lane.b32.xlu0 %v970_v33, %s3239_s3  ;;  %v972_v38 = vmax.f32 %v3764_v35, 0.0  ;;  %2841 = vmatpush3.bf16.msra.mxu1 %v1237_v44 }
 0x191   :  { %v879_v37 = vpop.f32.mrb[16].mxu0  ;;  %v973_v45 = vmax.f32 %v949_v36, 0.0 }
 0x192   :  { %v3007_v39 = vadd.f32 %v879_v37, %v3662_v5  ;;  %1032 = vrot.lane.b32.xlu1 %v971_v3, %s3239_s3  ;;  %v881_v40 = vpop.f32.mrb[17].mxu0 }
 0x193   :  { %v3008_v41 = vadd.f32 %v881_v40, %v3664_v6  ;;  %v883_v43 = vpop.f32.mrb[18].mxu0 }
 0x194   :  { %v3781_v46 = vadd.f32 %v3007_v39, %v3681_v18  ;;  %v3009_v47 = vadd.f32 %v883_v43, %v3666_v7  ;;  %1034 = vrot.lane.b32.xlu0 %v972_v38, %s3239_s3  ;;  %v885_v5 = vpop.f32.mrb[19].mxu0 }
 0x195   :  { %v951_v50 = vadd.f32 %v3008_v41, %v3683_v22  ;;  %v3010_v6 = vadd.f32 %v885_v5, %v3668_v8 }
 0x196   :  { %v974_v51 = vmax.f32 %v3781_v46, 0.0  ;;  %v3791_v52 = vadd.f32 %v3009_v47, %v3681_v18  ;;  %1036 = vrot.lane.b32.xlu1 %v973_v45, %s3239_s3 }
 0x197   :  { %v975_v54 = vmax.f32 %v951_v50, 0.0  ;;  %v953_v7 = vadd.f32 %v3010_v6, %v3683_v22 }
 0x198   :  { %1038 = vrot.lane.b32.xlu0 %v974_v51, %s3239_s3  ;;  %v976_v8 = vmax.f32 %v3791_v52, 0.0 }
 0x199   :  { %v889_v55 = vpop.f32.mrb[20].mxu0  ;;  %v977_v2 = vmax.f32 %v953_v7, 0.0 }
 0x19a   :  { %v3011_v57 = vadd.f32 %v889_v55, %v3670_v9  ;;  %1040 = vrot.lane.b32.xlu1 %v975_v54, %s3239_s3  ;;  %v891_v58 = vpop.f32.mrb[21].mxu0  ;;  %v3814_v9 = vld [vmem:[%s4280_s4] sm:$0xff]  }
 0x19b   :  { %v3012_v60 = vadd.f32 %v891_v58, %v3672_v10  ;;  %v893_v13 = vpop.f32.mrb[22].mxu0  ;;  %2850 = vmatprep.subr.bf16.mxu1 %v3814_v9 }
 0x19c   :  { %v3805_v14 = vadd.f32 %v3011_v57, %v3681_v18  ;;  %v3013_v61 = vadd.f32 %v893_v13, %v3674_v11  ;;  %1042 = vrot.lane.b32.xlu0 %v976_v8, %s3239_s3  ;;  %v895_v62 = vpop.f32.mrb[23].mxu0 }
 0x19d   :  { %v955_v17 = vadd.f32 %v3012_v60, %v3683_v22  ;;  %v3014_v10 = vadd.f32 %v895_v62, %v3676_v12 }
 0x19e   :  { %v978_v19 = vmax.f32 %v3805_v14, 0.0  ;;  %v3820_v63 = vadd.f32 %v3013_v61, %v3681_v18  ;;  %1044 = vrot.lane.b32.xlu1 %v977_v2, %s3239_s3  ;;  %v3171_v14 = vld [vmem:[%s4280_s4 + $0x10] sm:$0xff]  }
 0x19f   :  { %v979_v11 = vmax.f32 %v955_v17, 0.0  ;;  %v957_v21 = vadd.f32 %v3014_v10, %v3683_v22 }
 0x1a0   :  { %1046 = vrot.lane.b32.xlu0 %v978_v19, %s3239_s3  ;;  %v980_v23 = vmax.f32 %v3820_v63, 0.0 }
 0x1a1   :  { %v981_v12 = vmax.f32 %v957_v21, 0.0 }
 0x1a2   :  { %1048 = vrot.lane.b32.xlu1 %v979_v11, %s3239_s3 }
 0x1a4   :  { %1050 = vrot.lane.b32.xlu0 %v980_v23, %s3239_s3 }
 0x1a6   :  { %1052 = vrot.lane.b32.xlu1 %v981_v12, %s3239_s3 }
 0x1ea   :  { %v1007_v18 = vpop.permute.xlu0 %1006 }
 0x1ec   :  { %v1011_v24 = vpop.permute.xlu1 %1010 }
 0x1ee   :  { %v1009_v25 = vpop.permute.xlu0 %1008 }
 0x1ef   :  { %v1055_v22 = vsel %vm1054_vm4, %v1007_v18, %v1009_v25 }
 0x1f0   :  { %v1079_v27 = vmax.f32 %v958_v31, %v1055_v22  ;;  %v1013_v29 = vpop.permute.xlu1 %1012 }
 0x1f1   :  { %v1056_v0 = vsel %vm1054_vm4, %v1011_v24, %v1013_v29 }
 0x1f2   :  { %1092 = vst.msk [vmem:[#allocation2] sm:$0xff] %vm1091_vm3, %v1079_v27  ;;  %v1080_v30 = vmax.f32 %v960_v34, %v1056_v0  ;;  %v1015_v1 = vpop.permute.xlu0 %1014 }
 0x1f4   :  { %1093 = vst.msk [vmem:[#allocation2 + $0x8] sm:$0xff] %vm1091_vm3, %v1080_v30  ;;  %v1017_v3 = vpop.permute.xlu1 %1016 }
 0x1f5   :  { %v1057_v36 = vsel %vm1054_vm4, %v1015_v1, %v1017_v3 }
 0x1f6   :  { %v1081_v37 = vmax.f32 %v962_v48, %v1057_v36  ;;  %v1019_v4 = vpop.permute.xlu0 %1018 }
 0x1f8   :  { %1094 = vst.msk [vmem:[#allocation2 + $0x10] sm:$0xff] %vm1091_vm3, %v1081_v37  ;;  %v1021_v28 = vpop.permute.xlu1 %1020 }
 0x1f9   :  { %v1058_v31 = vsel %vm1054_vm4, %v1019_v4, %v1021_v28 }
 0x1fa   :  { %v1082_v39 = vmax.f32 %v964_v53, %v1058_v31  ;;  %v1023_v32 = vpop.permute.xlu0 %1022 }
 0x1fb   :  { %v1105_v40 = vld [vmem:[#allocation2 + $0x1] sm:$0xff] }
 0x1fc   :  { %1095 = vst.msk [vmem:[#allocation2 + $0x18] sm:$0xff] %vm1091_vm3, %v1082_v39  ;;  %v1025_v34 = vpop.permute.xlu1 %1024  ;;  %v3853_v44 = vmax.f32 %v1079_v27, %v1105_v40 }
 0x1fd   :  { %v1059_v41 = vsel %vm1054_vm4, %v1023_v32, %v1025_v34 }
 0x1fe   :  { %v1083_v42 = vmax.f32 %v966_v15, %v1059_v41  ;;  %v1027_v48 = vpop.permute.xlu0 %1026  ;;  %v1569_v59 = vrot.slane %v3853_v44, 6  ;;  %v1154_v58 = vrot.slane %v3853_v44, 2 }
 0x1ff   :  { %v1106_v43 = vld [vmem:[#allocation2 + $0x9] sm:$0xff] }
 0x200   :  { %1096 = vst.msk [vmem:[#allocation2 + $0x20] sm:$0xff] %vm1091_vm3, %v1083_v42  ;;  %v1029_v45 = vpop.permute.xlu1 %1028  ;;  %v3856_v47 = vmax.f32 %v1080_v30, %v1106_v43  ;;  %v3170_v43 = vld [vmem:[%s4280_s4 + $0x8] sm:$0xff]  }
 0x201   :  { %v1060_v49 = vsel %vm1054_vm4, %v1027_v48, %v1029_v45 }
 0x202   :  { %v1084_v53 = vmax.f32 %v968_v20, %v1060_v49  ;;  %v1031_v5 = vpop.permute.xlu0 %1030  ;;  %v1570_v15 = vrot.slane %v3856_v47, 6  ;;  %v1155_v7 = vrot.slane %v3856_v47, 2 }
 0x203   :  { %v1107_v50 = vld [vmem:[#allocation2 + $0x11] sm:$0xff] }
 0x204   :  { %1097 = vst.msk [vmem:[#allocation2 + $0x28] sm:$0xff] %vm1091_vm3, %v1084_v53  ;;  %v1033_v6 = vpop.permute.xlu1 %1032  ;;  %v3864_v54 = vmax.f32 %v1081_v37, %v1107_v50  ;;  %v3869_v57 = vsel %vm1568_vm5, %v1569_v59, %v1570_v15  ;;  %v1156_v62 = vsel %vm141_vm0, %v1154_v58, %v1155_v7  ;;  %v3172_v58 = vld [vmem:[%s4280_s4 + $0x18] sm:$0xff]  }
 0x205   :  { %v1061_v55 = vsel %vm1054_vm4, %v1031_v5, %v1033_v6 }
 0x206   :  { %v3873_v16 = vmax.f32 %v970_v33, %v1061_v55  ;;  %v1035_v20 = vpop.permute.xlu0 %1034  ;;  %v1157_v60 = vrot.slane %v3864_v54, 2  ;;  %v1572_v13 = vrot.slane %v3864_v54, 6  ;;  %v1726_v2 = vpack.c.bf16 %v3864_v54, %v3856_v47 }
 0x207   :  { %v1108_v33 = vld [vmem:[#allocation2 + $0x19] sm:$0xff] }
 0x208   :  { %1098 = vst.msk [vmem:[#allocation2 + $0x30] sm:$0xff] %vm1091_vm3, %v3873_v16  ;;  %v1037_v61 = vpop.permute.xlu1 %1036  ;;  %v1158_v26 = vsel %vm141_vm0, %v1155_v7, %v1157_v60  ;;  %v3885_v17 = vsel %vm1568_vm5, %v1570_v15, %v1572_v13  ;;  %v3893_v25 = vmax.f32 %v1082_v39, %v1108_v33 }
 0x209   :  { %v1062_v10 = vsel %vm1054_vm4, %v1035_v20, %v1037_v61  ;;  %v1182_v11 = vpack.c.bf16 %v1158_v26, %v1156_v62  ;;  %v1597_v21 = vpack.c.bf16 %v3885_v17, %v3869_v57  ;;  %v3173_v26 = vld [vmem:[%s4280_s4 + $0x20] ss:$0 sps:$4 sm:$0xff]  }
 0x20a   :  { %v1086_v12 = vmax.f32 %v972_v38, %v1062_v10  ;;  %v1039_v18 = vpop.permute.xlu0 %1038  ;;  %v1574_v35 = vrot.slane %v3893_v25, 6  ;;  %v1159_v31 = vrot.slane %v3893_v25, 2 }
 0x20b   :  { %2842 = vmatprep.mubr.msk.bf16.mxu1 %vm1091_vm3, %v1182_v11  ;;  %v1109_v24 = vld [vmem:[#allocation2 + $0x21] sm:$0xff] }
 0x20c   :  { %1099 = vst.msk [vmem:[#allocation2 + $0x38] sm:$0xff] %vm1091_vm3, %v1086_v12  ;;  %v1041_v22 = vpop.permute.xlu1 %1040  ;;  %v3896_v27 = vmax.f32 %v1083_v42, %v1109_v24  ;;  %v1344_v24 = vsel %vm1235_vm2, %v3173_v26, 0 }
 0x20d   :  { %v1063_v29 = vsel %vm1054_vm4, %v1039_v18, %v1041_v22  ;;  %v3174_v22 = vld [vmem:[%s4280_s4 + $0x48] sm:$0xff]  }
 0x20e   :  { %v1087_v0 = vmax.f32 %v974_v51, %v1063_v29  ;;  %v1043_v30 = vpop.permute.xlu0 %1042  ;;  %v1575_v38 = vrot.slane %v3896_v27, 6  ;;  %v1160_v37 = vrot.slane %v3896_v27, 2 }
 0x20f   :  { %v1110_v1 = vld [vmem:[#allocation2 + $0x29] sm:$0xff] }
 0x210   :  { %1100 = vst.msk [vmem:[#allocation2 + $0x40] sm:$0xff] %vm1091_vm3, %v1087_v0  ;;  %v1045_v3 = vpop.permute.xlu1 %1044  ;;  %v3904_v36 = vmax.f32 %v1084_v53, %v1110_v1  ;;  %v3909_v28 = vsel %vm1568_vm5, %v1574_v35, %v1575_v38  ;;  %v1161_v41 = vsel %vm141_vm0, %v1159_v31, %v1160_v37  ;;  %v1414_v31 = vrot.slane %v3864_v54, 4 }
 0x211   :  { %v1064_v4 = vsel %vm1054_vm4, %v1043_v30, %v1045_v3 }
 0x212   :  { %v1088_v46 = vmax.f32 %v976_v8, %v1064_v4  ;;  %v1047_v51 = vpop.permute.xlu0 %1046  ;;  %v1162_v39 = vrot.slane %v3904_v36, 2  ;;  %v1577_v32 = vrot.slane %v3904_v36, 6  ;;  %v1727_v34 = vpack.c.bf16 %v3904_v36, %v3896_v27 }
 0x213   :  { %v1111_v53 = vld [vmem:[#allocation2 + $0x31] sm:$0xff]  ;;  %v1130_v4 = vpack.c.bf16 %v3896_v27, %v3893_v25 }
 0x214   :  { %1101 = vst.msk [vmem:[#allocation2 + $0x48] sm:$0xff] %vm1091_vm3, %v1088_v46  ;;  %v1049_v40 = vpop.permute.xlu1 %1048  ;;  %v1163_v42 = vsel %vm141_vm0, %v1160_v37, %v1162_v39  ;;  %v3922_v52 = vsel %vm1568_vm5, %v1575_v38, %v1577_v32  ;;  %v3944_v7 = vmax.f32 %v3873_v16, %v1111_v53  ;;  %v1129_v37 = vpack.c.bf16 %v3856_v47, %v3853_v44  ;;  %v3176_v39 = vld [vmem:[%s4280_s4 + $0x58] sm:$0xff]  }
 0x215   :  { %v1065_v8 = vsel %vm1054_vm4, %v1047_v51, %v1049_v40  ;;  %v1183_v48 = vpack.c.bf16 %v1163_v42, %v1161_v41  ;;  %v1598_v45 = vpack.c.bf16 %v3922_v52, %v3909_v28  ;;  %v1412_v32 = vrot.slane %v3856_v47, 4  ;;  %v3187_v28 = vld [vmem:[%s4280_s4 + $0xa8] sm:$0xff]   ;;  %v3188_v52 = vld [vmem:[%s4280_s4 + $0xb0] ss:$0 sps:$4 sm:$0xff]   ;;  %v2718_v47 = vld [vmem:[%s4281_s5] ss:$0 sm:$0xff] }
 0x216   :  { %v1089_v49 = vmax.f32 %v978_v19, %v1065_v8  ;;  %v1051_v50 = vpop.permute.xlu0 %1050  ;;  %v1164_v60 = vrot.slane %v3944_v7, 2  ;;  %v1411_v40 = vrot.slane %v3853_v44, 4  ;;  %v3178_v44 = vld [vmem:[%s4280_s4 + $0x68] ss:$0 sps:$4 sm:$0xff]   ;;  %v1579_v17 = vrot.slane %v3944_v7, 6 }
 0x217   :  { %2843 = vmatmul.mubr.msk.bf16.vlgmr.msra.gmra.mrb[24].mxu1 %vm1091_vm3, %v1183_v48  ;;  %v1112_v5 = vld [vmem:[#allocation2 + $0x39] sm:$0xff]  ;;  %v1415_v41 = vsel %vm1235_vm2, %v1412_v32, %v1414_v31 }
 0x218   :  { %1102 = vst.msk [vmem:[#allocation2 + $0x50] sm:$0xff] %vm1091_vm3, %v1089_v49  ;;  %v1053_v59 = vpop.permute.xlu1 %1052  ;;  %2851 = vmatpush3.bf16.msra.mxu1 %v3814_v9  ;;  %v3935_v15 = vmax.f32 %v1086_v12, %v1112_v5  ;;  %v1413_v8 = vsel %vm1235_vm2, %v1411_v40, %v1412_v32  ;;  %v3177_v48 = vld [vmem:[%s4280_s4 + $0x60] sm:$0xff]   ;;  %v1417_v5 = vrot.slane %v3896_v27, 4 }
 0x219   :  { %v1066_v6 = vsel %vm1054_vm4, %v1051_v50, %v1053_v59  ;;  %2852 = vmatprep.subr.bf16.mxu1 %v3170_v43  ;;  %v1493_v50 = vsel %vm1235_vm2, %v3178_v44, 0  ;;  %v3179_v59 = vld [vmem:[%s4280_s4 + $0x6c] sm:$0xff]  }
 0x21a   :  { %v1090_v19 = vmax.f32 %v980_v23, %v1066_v6  ;;  %v1165_v9 = vrot.slane %v3935_v15, 2  ;;  %v1131_v51 = vpack.c.bf16 %v3935_v15, %v3944_v7  ;;  %v1422_v6 = vrot.slane %v3935_v15, 4 }
 0x21b   :  { %v1113_v55 = vld [vmem:[#allocation2 + $0x41] sm:$0xff]  ;;  %v1580_v57 = vrot.slane %v3935_v15, 6 }
 0x21c   :  { %1103 = vst.msk [vmem:[#allocation2 + $0x58] sm:$0xff] %vm1091_vm3, %v1090_v19  ;;  %v3947_v20 = vmax.f32 %v1087_v0, %v1113_v55  ;;  %2853 = vmatpush3.bf16.msra.mxu1 %v3170_v43  ;;  %v1166_v13 = vsel %vm141_vm0, %v1164_v60, %v1165_v9  ;;  %v1439_v43 = vpack.c.bf16 %v1415_v41, %v1413_v8  ;;  %v1421_v55 = vrot.slane %v3944_v7, 4 }
 0x21d   :  { %2854 = vmatprep.subr.bf16.mxu1 %v3171_v14 }
 0x21e   :  { %v1167_v63 = vrot.slane %v3947_v20, 2  ;;  %v1728_v23 = vpack.c.bf16 %v3947_v20, %v3935_v15  ;;  %v1424_v53 = vrot.slane %v3947_v20, 4 }
 0x21f   :  { %v1114_v16 = vld [vmem:[#allocation2 + $0x49] sm:$0xff] }
 0x220   :  { %v1168_v61 = vsel %vm141_vm0, %v1165_v9, %v1167_v63  ;;  %2855 = vmatpush3.bf16.msra.mxu1 %v3171_v14  ;;  %v3962_v33 = vmax.f32 %v1088_v46, %v1114_v16  ;;  %v3175_v46 = vld [vmem:[%s4280_s4 + $0x50] sm:$0xff]   ;;  %v1416_v14 = vrot.slane %v3893_v25, 4  ;;  %v1425_v9 = vsel %vm1235_vm2, %v1422_v6, %v1424_v53 }
 0x221   :  { %v1184_v62 = vpack.c.bf16 %v1168_v61, %v1166_v13  ;;  %2856 = vmatprep.subr.bf16.mxu1 %v3172_v58  ;;  %v1423_v63 = vsel %vm1235_vm2, %v1421_v55, %v1422_v6  ;;  %v3180_v16 = vld [vmem:[%s4280_s4 + $0x74] sm:$0xff]   ;;  %v3189_v6 = vld [vmem:[%s4282_s6 + $0x40] sm:$0xff]   ;;  %v3192_v55 = vld [vmem:[%s4282_s6 + $0x8] sm:$0xff]  }
 0x222   :  { %v1169_v0 = vrot.slane %v3962_v33, 2  ;;  %v1441_v25 = vpack.c.bf16 %v1425_v9, %v1423_v63  ;;  %v1584_v7 = vrot.slane %v3962_v33, 6  ;;  %v3193_v9 = vld [vmem:[%s4282_s6 + $0x50] sm:$0xff]   ;;  %v3196_v63 = vld [vmem:[%s4282_s6 + $0x18] sm:$0xff]  }
 0x223   :  { %v1116_v10 = vld [vmem:[#allocation2 + $0x59] sm:$0xff]  ;;  %2846 = vmatprep.mubr.msk.bf16.mxu1 %vm1091_vm3, %v1184_v62  ;;  %v1115_v11 = vld [vmem:[#allocation2 + $0x51] sm:$0xff]  ;;  %v1426_v62 = vrot.slane %v3962_v33, 4 }
 0x224   :  { %v3965_v12 = vmax.f32 %v1090_v19, %v1116_v10  ;;  %v3967_v18 = vmax.f32 %v1089_v49, %v1115_v11  ;;  %2857 = vmatpush3.bf16.msra.mxu1 %v3172_v58  ;;  %v1419_v49 = vrot.slane %v3904_v36, 4  ;;  %v1418_v58 = vsel %vm1235_vm2, %v1416_v14, %v1417_v5  ;;  %v3190_v14 = vld [vmem:[%s4282_s6] sm:$0xff]  }
 0x225   :  { %3120 = vmatprep.subr.msk.bf16.mxu1 %vm1235_vm2, %v3173_v26  ;;  %v3181_v26 = vld [vmem:[%s4280_s4 + $0x7c] sm:$0xff]  }
 0x226   :  { %v1172_v29 = vrot.slane %v3965_v12, 2  ;;  %v1170_v30 = vrot.slane %v3967_v18, 2  ;;  %v1729_v1 = vpack.c.bf16 %v3965_v12, %v3967_v18  ;;  %v1132_v42 = vpack.c.bf16 %v3967_v18, %v3962_v33 }
 0x227   :  { %v1420_v19 = vsel %vm1235_vm2, %v1417_v5, %v1419_v49  ;;  %v1429_v13 = vrot.slane %v3965_v12, 4  ;;  %v1427_v61 = vrot.slane %v3967_v18, 4 }
 0x228   :  { %v1171_v35 = vsel %vm141_vm0, %v1169_v0, %v1170_v30  ;;  %v1173_v38 = vsel %vm141_vm0, %v1170_v30, %v1172_v29  ;;  %2859 = vmatpush3.bf16.msra.mxu1 %v1344_v24  ;;  %v1440_v60 = vpack.c.bf16 %v1420_v19, %v1418_v58  ;;  %v3183_v29 = vld [vmem:[%s4280_s4 + $0x8c] ss:$0 sps:$4 sm:$0xff]   ;;  %v1582_v0 = vrot.slane %v3947_v20, 6  ;;  %v3194_v58 = vld [vmem:[%s4282_s6 + $0x10] sm:$0xff]  }
 0x229   :  { %v1185_v3 = vpack.c.bf16 %v1173_v38, %v1171_v35  ;;  %2868 = vmatprep.subr.bf16.mxu1 %v3174_v22  ;;  %v1428_v10 = vsel %vm1235_vm2, %v1426_v62, %v1427_v61  ;;  %v1430_v11 = vsel %vm1235_vm2, %v1427_v61, %v1429_v13  ;;  %v1651_v30 = vsel %vm1235_vm2, %v3183_v29, 0  ;;  %v3184_v35 = vld [vmem:[%s4280_s4 + $0x90] sm:$0xff]   ;;  %v3191_v19 = vld [vmem:[%s4282_s6 + $0x48] sm:$0xff]  }
 0x22a   :  { %v1442_v24 = vpack.c.bf16 %v1430_v11, %v1428_v10  ;;  %v1581_v38 = vsel %vm1568_vm5, %v1579_v17, %v1580_v57  ;;  %vm2430_vm0 = vcmask 261120  }
 0x22b   :  { %2847 = vmatmul.mubr.msk.bf16.gmra.mrb[28].mxu1 %vm1091_vm3, %v1185_v3  ;;  %v3185_v3 = vld [vmem:[%s4280_s4 + $0x98] sm:$0xff]  }
 0x22c   :  { %2860 = vmatprep.mubr.msk.bf16.mxu1 %vm1091_vm3, %v1129_v37  ;;  %v1587_v37 = vrot.slane %v3965_v12, 6 }
 0x233   :  { %2861 = vmatmul.mubr.msk.bf16.vlgmr.msra.gmra.mrb[24].mxu1 %vm1091_vm3, %v1130_v4 }
 0x234   :  { %2869 = vmatpush3.bf16.msra.mxu1 %v3174_v22  ;;  %2864 = vmatprep.mubr.msk.bf16.mxu1 %vm1091_vm3, %v1131_v51  ;;  %v3182_v22 = vld [vmem:[%s4280_s4 + $0x84] sm:$0xff]  }
 0x235   :  { %2870 = vmatprep.subr.bf16.mxu1 %v3175_v46  ;;  %v3186_v51 = vld [vmem:[%s4280_s4 + $0xa0] sm:$0xff]  }
 0x238   :  { %2871 = vmatpush3.bf16.msra.mxu1 %v3175_v46  ;;  %v1585_v46 = vrot.slane %v3967_v18, 6 }
 0x239   :  { %2872 = vmatprep.subr.bf16.mxu1 %v3176_v39 }
 0x23a   :  { %v1586_v31 = vsel %vm1568_vm5, %v1584_v7, %v1585_v46 }
 0x23b   :  { %2865 = vmatmul.mubr.msk.bf16.gmra.mrb[28].mxu1 %vm1091_vm3, %v1132_v42 }
 0x23c   :  { %2873 = vmatpush3.bf16.msra.mxu1 %v3176_v39  ;;  %2878 = vmatprep.mubr.msk.bf16.mxu1 %vm1091_vm3, %v1439_v43  ;;  %v1588_v39 = vsel %vm1568_vm5, %v1585_v46, %v1587_v37  ;;  %v3200_v37 = vld [vmem:[%s4282_s6 + $0x28] sm:$0xff]  }
 0x23d   :  { %2874 = vmatprep.subr.bf16.mxu1 %v3177_v48  ;;  %v1600_v32 = vpack.c.bf16 %v1588_v39, %v1586_v31  ;;  %v3202_v39 = vld [vmem:[%s4282_s6 + $0x30] sm:$0xff]  }
 0x240   :  { %2875 = vmatpush3.bf16.msra.mxu1 %v3177_v48 }
 0x241   :  { %3121 = vmatprep.subr.msk.bf16.mxu1 %vm1235_vm2, %v3178_v44 }
 0x244   :  { %2877 = vmatpush3.bf16.msra.mxu1 %v1493_v50 }
 0x245   :  { %2886 = vmatprep.subr.bf16.mxu1 %v3179_v59 }
 0x247   :  { %2879 = vmatmul.mubr.msk.bf16.vlgmr.msra.gmra.mrb[24].mxu1 %vm1091_vm3, %v1440_v60  ;;  %v3195_v60 = vld [vmem:[%s4282_s6 + $0x58] sm:$0xff]  }
 0x248   :  { %2882 = vmatprep.mubr.msk.bf16.mxu1 %vm1091_vm3, %v1441_v25  ;;  %2887 = vmatpush3.bf16.msra.mxu1 %v3179_v59 }
 0x249   :  { %2888 = vmatprep.subr.bf16.mxu1 %v3180_v16 }
 0x24c   :  { %2889 = vmatpush3.bf16.msra.mxu1 %v3180_v16  ;;  %v3197_v16 = vld [vmem:[%s4282_s6 + $0x60] sm:$0xff]  }
 0x24d   :  { %2890 = vmatprep.subr.bf16.mxu1 %v3181_v26 }
 0x24f   :  { %2883 = vmatmul.mubr.msk.bf16.gmra.mrb[28].mxu1 %vm1091_vm3, %v1442_v24 }
 0x250   :  { %2891 = vmatpush3.bf16.msra.mxu1 %v3181_v26  ;;  %2896 = vmatprep.mubr.msk.bf16.mxu1 %vm1091_vm3, %v1597_v21  ;;  %v1583_v21 = vsel %vm1568_vm5, %v1580_v57, %v1582_v0 }
 0x251   :  { %2892 = vmatprep.subr.bf16.mxu1 %v3182_v22  ;;  %v1599_v4 = vpack.c.bf16 %v1583_v21, %v1581_v38  ;;  %v3198_v38 = vld [vmem:[%s4282_s6 + $0x20] sm:$0xff]  }
 0x254   :  { %2893 = vmatpush3.bf16.msra.mxu1 %v3182_v22 }
 0x255   :  { %3122 = vmatprep.subr.msk.bf16.mxu1 %vm1235_vm2, %v3183_v29 }
 0x258   :  { %2895 = vmatpush3.bf16.msra.mxu1 %v1651_v30 }
 0x259   :  { %2904 = vmatprep.subr.bf16.mxu1 %v3184_v35 }
 0x25b   :  { %2897 = vmatmul.mubr.msk.bf16.vlgmr.msra.gmra.mrb[24].mxu1 %vm1091_vm3, %v1598_v45  ;;  %v1780_v45 = vsel %vm1235_vm2, %v3188_v52, 0 }
 0x25c   :  { %2900 = vmatprep.mubr.msk.bf16.mxu1 %vm1091_vm3, %v1599_v4  ;;  %2905 = vmatpush3.bf16.msra.mxu1 %v3184_v35  ;;  %v3201_v4 = vld [vmem:[%s4282_s6 + $0x70] sm:$0xff]  }
 0x25d   :  { %2906 = vmatprep.subr.bf16.mxu1 %v3185_v3 }
 0x260   :  { %2907 = vmatpush3.bf16.msra.mxu1 %v3185_v3  ;;  %v3199_v3 = vld [vmem:[%s4282_s6 + $0x68] sm:$0xff]  }
 0x261   :  { %2908 = vmatprep.subr.bf16.mxu1 %v3186_v51 }
 0x263   :  { %2901 = vmatmul.mubr.msk.bf16.gmra.mrb[28].mxu1 %vm1091_vm3, %v1600_v32  ;;  %v3203_v32 = vld [vmem:[%s4282_s6 + $0x78] sm:$0xff]  }
 0x264   :  { %2909 = vmatpush3.bf16.msra.mxu1 %v3186_v51  ;;  %2914 = vmatprep.mubr.msk.bf16.mxu1 %vm1091_vm3, %v1726_v2 }
 0x265   :  { %2910 = vmatprep.subr.bf16.mxu1 %v3187_v28 }
 0x268   :  { %2911 = vmatpush3.bf16.msra.mxu1 %v3187_v28 }
 0x269   :  { %3123 = vmatprep.subr.msk.bf16.mxu1 %vm1235_vm2, %v3188_v52  ;;  %vm2539_vm2 = vcmask 58369  }
 0x26c   :  { %2913 = vmatpush3.bf16.msra.mxu1 %v1780_v45 }
 0x26d   :  { %2790 = vmatprep.subr.bf16.mxu1 %v3189_v6 }
 0x26f   :  { %2915 = vmatmul.mubr.msk.bf16.vlgmr.msra.gmra.mrb[24].mxu1 %vm1091_vm3, %v1727_v34 }
 0x270   :  { %2918 = vmatprep.mubr.msk.bf16.mxu1 %vm1091_vm3, %v1728_v23  ;;  %2791 = vmatpush3.bf16.msra.mxu1 %v3190_v14  ;;  %v2158_v14 = vld [vmem:[%s4284_s8] sm:$0xff] }
 0x271   :  { %2792 = vmatprep.subr.bf16.mxu1 %v3191_v19  ;;  %v2159_v19 = vld [vmem:[%s4284_s8 + $0x8] sm:$0xff] }
 0x274   :  { %2793 = vmatpush3.bf16.msra.mxu1 %v3192_v55 }
 0x275   :  { %2794 = vmatprep.subr.bf16.mxu1 %v3193_v9 }
 0x277   :  { %2919 = vmatmul.mubr.msk.bf16.gmra.mrb[28].mxu1 %vm1091_vm3, %v1729_v1 }
 0x278   :  { %2795 = vmatpush3.bf16.msra.mxu1 %v3194_v58  ;;  %v2967_v58 = vpack.c.bf16 %v2159_v19, %v2158_v14  ;;  %v2743_v14 = vld [vmem:[%s4290_s14] ss:$0 sm:$0xff]  ;;  %s3245_s14 = smov [#allocation6]  }
 0x279   :  { %2796 = vmatprep.subr.bf16.mxu1 %v3195_v60 }
 0x27c   :  { %2797 = vmatpush3.bf16.msra.mxu1 %v3196_v63  ;;  %v2160_v63 = vld [vmem:[%s4284_s8 + $0x10] sm:$0xff] }
 0x27d   :  { %2798 = vmatprep.subr.bf16.mxu1 %v3197_v16  ;;  %v2161_v16 = vld [vmem:[%s4284_s8 + $0x18] sm:$0xff] }
 0x280   :  { %2799 = vmatpush3.bf16.msra.mxu1 %v3198_v38 }
 0x281   :  { %2800 = vmatprep.subr.bf16.mxu1 %v3199_v3 }
 0x284   :  { %2801 = vmatpush3.bf16.msra.mxu1 %v3200_v37  ;;  %v2246_v37 = vld [vmem:[%s4298_s27] sm:$0xf] }
 0x285   :  { %2802 = vmatprep.subr.bf16.mxu1 %v3201_v4  ;;  %v2736_v4 = vld [vmem:[%s4285_s9] ss:$0 sm:$0xff] }
 0x288   :  { %2803 = vmatpush3.bf16.msra.mxu1 %v3202_v39 }
 0x289   :  { %2804 = vmatprep.subr.bf16.mxu1 %v3203_v32 }
 0x342   :  { %v2916_v54 = vpop.f32.mrb[24].mxu1 }
 0x343   :  { %v1864_v2 = vadd.f32 %v2916_v54, %v2718_v47  ;;  %v1816_v33 = vpop.f32.mrb[25].mxu1 }
 0x344   :  { %v2917_v27 = vpop.f32.mrb[26].mxu1  ;;  %v1862_v34 = vadd.f32 %v2718_v47, %v1816_v33 }
 0x345   :  { %v1872_v36 = vmax.f32 %v1864_v2, 0.0  ;;  %v1865_v40 = vadd.f32 %v2917_v27, %v2718_v47  ;;  %v1819_v41 = vpop.f32.mrb[27].mxu1 }
 0x346   :  { %v1863_v20 = vadd.f32 %v2718_v47, %v1819_v41  ;;  %v1870_v23 = vmax.f32 %v1862_v34, 0.0 }
 0x347   :  { %v1873_v15 = vmax.f32 %v1865_v40, 0.0  ;;  %1890 = vrot.lane.b32.xlu0 %v1872_v36, %s3241_s29 }
 0x348   :  { %v1871_v18 = vmax.f32 %v1863_v20, 0.0 }
 0x349   :  { %1892 = vrot.lane.b32.xlu1 %v1873_v15, %s3241_s29 }
 0x34a   :  { %v2920_v12 = vpop.f32.mrb[28].mxu1 }
 0x34b   :  { %1886 = vrot.lane.b32.xlu0 %v1870_v23, %s3241_s29  ;;  %v1832_v1 = vpop.f32.mrb[29].mxu1  ;;  %v1868_v43 = vadd.f32 %v2920_v12, %v2718_v47 }
 0x34c   :  { %v1866_v42 = vadd.f32 %v2718_v47, %v1832_v1  ;;  %v2921_v8 = vpop.f32.mrb[30].mxu1 }
 0x34d   :  { %1888 = vrot.lane.b32.xlu1 %v1871_v18, %s3241_s29  ;;  %v1835_v48 = vpop.f32.mrb[31].mxu1  ;;  %v1869_v53 = vadd.f32 %v2921_v8, %v2718_v47  ;;  %v1876_v50 = vmax.f32 %v1868_v43, 0.0 }
 0x34e   :  { %v1874_v44 = vmax.f32 %v1866_v42, 0.0  ;;  %v1867_v49 = vadd.f32 %v2718_v47, %v1835_v48 }
 0x34f   :  { %v1877_v59 = vmax.f32 %v1869_v53, 0.0 }
 0x350   :  { %v1875_v5 = vmax.f32 %v1867_v49, 0.0  ;;  %1894 = vrot.lane.b32.xlu0 %v1874_v44, %s3241_s29 }
 0x352   :  { %1896 = vrot.lane.b32.xlu1 %v1875_v5, %s3241_s29 }
 0x354   :  { %1898 = vrot.lane.b32.xlu0 %v1876_v50, %s3241_s29 }
 0x356   :  { %1900 = vrot.lane.b32.xlu1 %v1877_v59, %s3241_s29 }
 0x3b9   :  { %v1891_v13 = vpop.permute.xlu0 %1890 }
 0x3ba   :  { %v1912_v25 = vmax.f32 %v1872_v36, %v1891_v13  ;;  %v2970_v13 = vpack.c.bf16 %v2161_v16, %v2160_v63 }
 0x3bb   :  { %v1893_v61 = vpop.permute.xlu1 %1892 }
 0x3bc   :  { %1921 = vst.msk [vmem:[#allocation3 + $0x10] sm:$0xff] %vm1918_vm6, %v1912_v25  ;;  %v1913_v62 = vmax.f32 %v1873_v15, %v1893_v61  ;;  %v2162_v25 = vld [vmem:[%s4284_s8 + $0x20] sm:$0xff]  ;;  %v2163_v61 = vld [vmem:[%s4284_s8 + $0x28] sm:$0xff] }
 0x3bd   :  { %v1887_v26 = vpop.permute.xlu0 %1886 }
 0x3be   :  { %1922 = vst.msk [vmem:[#allocation3 + $0x18] sm:$0xff] %vm1918_vm6, %v1913_v62  ;;  %v1910_v10 = vmax.f32 %v1870_v23, %v1887_v26  ;;  %v2973_v62 = vpack.c.bf16 %v2163_v61, %v2162_v25  ;;  %v2164_v26 = vld [vmem:[%s4284_s8 + $0x30] sm:$0xff] }
 0x3bf   :  { %v1889_v11 = vpop.permute.xlu1 %1888 }
 0x3c0   :  { %1919 = vst.msk [vmem:[#allocation3] sm:$0xff] %vm1918_vm6, %v1910_v10  ;;  %v1911_v24 = vmax.f32 %v1871_v18, %v1889_v11  ;;  %v2165_v10 = vld [vmem:[%s4284_s8 + $0x38] sm:$0xff] }
 0x3c1   :  { %v2976_v11 = vpack.c.bf16 %v2165_v10, %v2164_v26 }
 0x3c2   :  { %1920 = vst.msk [vmem:[#allocation3 + $0x8] sm:$0xff] %vm1918_vm6, %v1911_v24  ;;  %v1895_v22 = vpop.permute.xlu0 %1894 }
 0x3c3   :  { %v1914_v29 = vmax.f32 %v1874_v44, %v1895_v22  ;;  %v3204_v44 = vld [vmem:[%s4282_s6 + $0x38] sm:$0xff]   ;;  %v2719_v22 = vld [vmem:[%s4283_s7] ss:$0 sm:$0xff] }
 0x3c4   :  { %v1897_v0 = vpop.permute.xlu1 %1896  ;;  %2805 = vmatpush3.bf16.msra.mxu1 %v3204_v44 }
 0x3c5   :  { %1923 = vst.msk [vmem:[#allocation3 + $0x20] sm:$0xff] %vm1918_vm6, %v1914_v29  ;;  %v1915_v30 = vmax.f32 %v1875_v5, %v1897_v0  ;;  %v3242_v5 = vmov 0.0|0.0  }
 0x3c6   :  { %v1899_v35 = vpop.permute.xlu0 %1898  ;;  %2966 = vmatprep.subr.bf16.mxu1 %v3242_v5 }
 0x3c7   :  { %1924 = vst.msk [vmem:[#allocation3 + $0x28] sm:$0xff] %vm1918_vm6, %v1915_v30  ;;  %v1916_v57 = vmax.f32 %v1876_v50, %v1899_v35  ;;  %v1938_v46 = vld [vmem:[#allocation3 + $0x4] ss:$16 sm:$0x3]  ;;  %v2247_v35 = vld [vmem:[%s4286_s10] sm:$0xff] }
 0x3c8   :  { %v1901_v17 = vpop.permute.xlu1 %1900  ;;  %v1942_v7 = vld [vmem:[#allocation3 + $0x6] ss:$16 sm:$0x3]  ;;  %v1927_v51 = vld [vmem:[#allocation3] ss:$16 sm:$0x3] }
 0x3c9   :  { %1925 = vst.msk [vmem:[#allocation3 + $0x30] sm:$0xff] %vm1918_vm6, %v1916_v57  ;;  %v1917_v21 = vmax.f32 %v1877_v59, %v1901_v17  ;;  %v1931_v31 = vld [vmem:[#allocation3 + $0x2] ss:$16 sm:$0x3]  ;;  %v2248_v57 = vld [vmem:[%s4286_s10 + $0x8] sm:$0x3] }
 0x3ca   :  { %v1963_v45 = vld [vmem:[#allocation3 + $0xc] ss:$16 sm:$0x3]  ;;  %v1967_v47 = vld [vmem:[#allocation3 + $0xe] ss:$16 sm:$0x3]  ;;  %v2979_v38 = vpack.c.bf16 %v2248_v57, %v2247_v35 }
 0x3cb   :  { %1926 = vst.msk [vmem:[#allocation3 + $0x38] sm:$0xff] %vm1918_vm6, %v1917_v21  ;;  %v1953_v36 = vld [vmem:[#allocation3 + $0x8] ss:$16 sm:$0x3] }
 0x3cc   :  { %v1957_v34 = vld [vmem:[#allocation3 + $0xa] ss:$16 sm:$0x3] }
 0x3d0   :  { %v1939_v28 = vld [vmem:[#allocation3 + $0x4] ss:$16 sm:$0xc]  ;;  %v1943_v52 = vld [vmem:[#allocation3 + $0x6] ss:$16 sm:$0xc] }
 0x3d1   :  { %v1940_v54 = vor.u32 %v1939_v28, %v1938_v46  ;;  %v1944_v2 = vor.u32 %v1943_v52, %v1942_v7  ;;  %v1928_v33 = vld [vmem:[#allocation3] ss:$16 sm:$0xc]  ;;  %v1932_v27 = vld [vmem:[#allocation3 + $0x2] ss:$16 sm:$0xc] }
 0x3d2   :  { %v1964_v40 = vld [vmem:[#allocation3 + $0xc] ss:$16 sm:$0xc]  ;;  %v1968_v41 = vld [vmem:[#allocation3 + $0xe] ss:$16 sm:$0xc]  ;;  %v1929_v15 = vor.u32 %v1928_v33, %v1927_v51  ;;  %v1933_v20 = vor.u32 %v1932_v27, %v1931_v31 }
 0x3d3   :  { %v1945_v23 = vmax.f32 %v1940_v54, %v1944_v2  ;;  %v1965_v12 = vor.u32 %v1964_v40, %v1963_v45  ;;  %v1969_v18 = vor.u32 %v1968_v41, %v1967_v47  ;;  %v1954_v1 = vld [vmem:[#allocation3 + $0x8] ss:$16 sm:$0xc]  ;;  %v1958_v42 = vld [vmem:[#allocation3 + $0xa] ss:$16 sm:$0xc] }
 0x3d4   :  { %v1934_v8 = vmax.f32 %v1929_v15, %v1933_v20  ;;  %v1955_v48 = vor.u32 %v1954_v1, %v1953_v36  ;;  %v1959_v43 = vor.u32 %v1958_v42, %v1957_v34  ;;  %v2738_v31 = vld [vmem:[%s4287_s11] ss:$0 sm:$0xff]  ;;  %v2355_v33 = vld [vmem:[%s4289_s13 + $0x8] sm:$0xff]  ;;  %v2523_v36 = vstv %s4292_s16 }
 0x3d5   :  { %1947 = vrot.lane.b32.xlu0 %v1945_v23, %s3241_s29  ;;  %v1970_v49 = vmax.f32 %v1965_v12, %v1969_v18  ;;  %v2354_v2 = vld [vmem:[%s4289_s13] sm:$0xff]  ;;  %3206 = vrcp.f32 %v2523_v36  ;;  %v2351_v12 = vld [vmem:[%s4288_s12 + $0x8] sm:$0xff] }
 0x3d6   :  { %1936 = vst.msk [vmem:[#allocation4] sm:$0xf] %vm1935_vm7, %v1934_v8  ;;  %v1960_v53 = vmax.f32 %v1955_v48, %v1959_v43  ;;  %v2983_v27 = vpack.c.bf16 %v2355_v33, %v2354_v2  ;;  %v2350_v23 = vld [vmem:[%s4288_s12] sm:$0xff]  ;;  %v2352_v48 = vld [vmem:[%s4288_s12 + $0x10] sm:$0xff]  ;;  %v2353_v43 = vld [vmem:[%s4288_s12 + $0x18] sm:$0xff] }
 0x3d7   :  { %1972 = vrot.lane.b32.xlu1 %v1970_v49, %s3241_s29  ;;  %v2986_v42 = vpack.c.bf16 %v2351_v12, %v2350_v23  ;;  %v2989_v44 = vpack.c.bf16 %v2353_v43, %v2352_v48 }
 0x3d8   :  { %1961 = vst.msk [vmem:[#allocation4 + $0x4] sm:$0xf] %vm1935_vm7, %v1960_v53 }
 0x3df   :  { %v3207_v34 = vpop.eup %3206 }
 0x3e0   :  { %3124 = vpush %v3207_v34 }
 0x411   :  { %s3125_s26 = spop %3124 }
 0x447   :  { %v1948_v50 = vpop.permute.xlu0 %1947 }
 0x448   :  { %1951 = vst.msk [vmem:[#allocation4] sm:$0xf] %vm1950_vm8, %v1948_v50 }
 0x449   :  { %v1973_v59 = vpop.permute.xlu1 %1972 }
 0x44a   :  { %1975 = vst.msk [vmem:[#allocation4 + $0x4] sm:$0xf] %vm1950_vm8, %v1973_v59 }
 0x451   :  { %v1976_v6 = vld [vmem:[#allocation4] sm:$0xff] }
 0x452   :  { %v1978_v55 = vcombine.high %v1976_v6, %v1976_v6  ;;  %v1980_v60 = vpack.c.bf16 %v1976_v6, %v1976_v6 }
 0x454   :  { %v1981_v9 = vpack.c.bf16 %v1978_v55, %v1978_v55 }
 0x456   :  { %2149 = vmatprep.mubr.bf16.mxu1 %v1981_v9 }
 0x457   :  { %2150 = vmatmul.mubr.bf16.vlgmr.msra.gmra.mrb[32].mxu1 %v1980_v60 }
 0x458   :  { %2968 = vmatpush3.bf16.msra.mxu1 %v2967_v58  ;;  %2938 = vmatprep.mubr.msk.f32.mxu1 %vm3243_vm9, %v3240_v56 }
 0x459   :  { %2969 = vmatprep.subr.bf16.mxu1 %v3242_v5 }
 0x45c   :  { %2971 = vmatpush3.bf16.msra.mxu1 %v2970_v13 }
 0x45d   :  { %2972 = vmatprep.subr.bf16.mxu1 %v3242_v5 }
 0x460   :  { %2974 = vmatpush3.bf16.msra.mxu1 %v2973_v62  ;;  %v2526_v62 = vld [vmem:[%s4291_s15] sm:$0x3]  ;;  %s2558_s15 = sshll.u32 %s3245_s14, 4  ;;  %s2559_s15 = int_to_ptr.vmem [resolvable:$true] %s2558_s15 }
 0x461   :  { %2975 = vmatprep.subr.bf16.mxu1 %v3242_v5  ;;  %s3214_s8 = scalar_lea.vmem %s2559_s15, 16  ;;  %s3218_s6 = scalar_lea.vmem %s2559_s15, 32 }
 0x462   :  { %p3215_p0 = scmp.ne.s32.totalorder %s2559_s15, %s3214_s8  ;;  %p3219_p1 = scmp.lt.s32.totalorder %s2559_s15, %s2559_s15 }
 0x463   :  { %p3220_p2 = scmp.lt.s32.totalorder %s3218_s6, %s3214_s8 }
 0x464   :  { %2977 = vmatpush3.bf16.msra.mxu1 %v2976_v11 }
 0x465   :  { %2978 = vmatprep.subr.bf16.mxu1 %v3242_v5  ;;  %p3221_p3 = por %p3220_p2, %p3219_p1 }
 0x467   :  { %p3222_p4 = pnand %p3221_p3, %p3215_p0 }
 0x52a   :  { %v2806_v24 = vpop.f32.mrb[32].mxu1 }
 0x52b   :  { %v2807_v29 = vpop.f32.mrb[33].mxu1 }
 0x52c   :  { %v2808_v0 = vadd.f32 %v2807_v29, %v2806_v24  ;;  %v2809_v30 = vpop.f32.mrb[34].mxu1  ;;  %v2529_v24 = vstv %s3125_s26 }
 0x52d   :  { %v2810_v17 = vpop.f32.mrb[35].mxu1 }
 0x52e   :  { %v2152_v21 = vadd.f32 %v2808_v0, %v2719_v22 }
 0x530   :  { %v2157_v3 = vmax.f32 %v2152_v21, 0.0 }
 0x532   :  { %2939 = vmatmul.mubr.msk.f32.vlgmr.msra.gmra.mrb[36].mxu1 %vm1918_vm6, %v2157_v3 }
 0x533   :  { %2981 = vmatpush3.bf16.msk.msra.mxu1 %vm2980_vm11, %v2979_v38  ;;  %2945 = vmatprep.mubr.msk.f32.mxu1 %vm3243_vm9, %v3240_v56 }
 0x534   :  { %2982 = vmatprep.subr.bf16.mxu1 %v3242_v5 }
 0x536   :  { %2946 = vmatmul.mubr.msk.f32.vlgmr.msra.gmra.mrb[38].mxu1 %vm2256_vm12, %v2246_v37 }
 0x537   :  { %2952 = vmatprep.mubr.msk.f32.mxu1 %vm3243_vm9, %v3240_v56  ;;  %2984 = vmatpush3.bf16.msra.mxu1 %v2983_v27 }
 0x538   :  { %2985 = vmatprep.subr.bf16.mxu1 %v3242_v5 }
 0x605   :  { %v2242_v46 = vpop.f32.mrb[36].mxu1 }
 0x606   :  { %v2243_v7 = vadd.f32 %v2736_v4, %v2242_v46  ;;  %v2940_v51 = vpop.f32.mrb[37].mxu1 }
 0x608   :  { %v2333_v39 = vmul.f32 %v2243_v7, %v2243_v7 }
 0x609   :  { %v2329_v32 = vpop.f32.mrb[38].mxu1 }
 0x60a   :  { %v2330_v28 = vadd.f32 %v2738_v31, %v2329_v32  ;;  %v2947_v52 = vpop.f32.mrb[39].mxu1  ;;  %v2335_v45 = vsel %vm2334_vm13, %v2333_v39, 0.0 }
 0x60b   :  { %2336 = vadd.xlane.f32.xlu0 %v2335_v45 }
 0x60c   :  { %v2338_v47 = vmul.f32 %v2330_v28, %v2330_v28 }
 0x60e   :  { %v2340_v54 = vsel %vm2339_vm14, %v2338_v47, 0.0 }
 0x60f   :  { %2341 = vadd.xlane.f32.xlu1 %v2340_v54 }
 0x698   :  { %v2337_v40 = vpop.xlane.xlu0 %2336 }
 0x69c   :  { %v2342_v41 = vpop.xlane.xlu1 %2341 }
 0x69d   :  { %v2343_v15 = vadd.f32 %v2342_v41, %v2337_v40 }
 0x69f   :  { %v2344_v20 = vmax.f32 %v2343_v15, 1e-24 }
 0x6a1   :  { %3208 = vrsqrt.f32 %v2344_v20 }
 0x6ab   :  { %v3209_v18 = vpop.eup %3208 }
 0x6ac   :  { %v2348_v1 = vmul.f32 %v3209_v18, %v2330_v28  ;;  %v2346_v49 = vmul.f32 %v3209_v18, %v2243_v7 }
 0x6ae   :  { %v2349_v8 = vmax.f32 %v2348_v1, 0.0  ;;  %v2347_v53 = vmax.f32 %v2346_v49, 0.0 }
 0x6b0   :  { %2953 = vmatmul.mubr.msk.f32.vlgmr.msra.gmra.mrb[40].mxu1 %vm2356_vm15, %v2349_v8 }
 0x6b1   :  { %2987 = vmatpush3.bf16.msra.mxu1 %v2986_v42  ;;  %2963 = vmatprep.mubr.msk.f32.mxu1 %vm3243_vm9, %v3240_v56 }
 0x6b2   :  { %2988 = vmatprep.subr.bf16.mxu1 %v3242_v5 }
 0x6b5   :  { %2990 = vmatpush3.bf16.msra.mxu1 %v2989_v44 }
 0x6b8   :  { %2964 = vmatmul.mubr.msk.f32.vlgmr.msra.gmra.mrb[42].mxu1 %vm2430_vm0, %v2347_v53 }
 0x783   :  { %v2426_v50 = vpop.f32.mrb[40].mxu1 }
 0x784   :  { %v2954_v59 = vpop.f32.mrb[41].mxu1 }
 0x78b   :  { %v2500_v6 = vpop.f32.mrb[42].mxu1 }
 0x78c   :  { %v2501_v19 = vadd.f32 %v2500_v6, %v2426_v50  ;;  %v2965_v55 = vpop.f32.mrb[43].mxu1 }
 0x78e   :  { %v2511_v9 = vadd.f32 %v2743_v14, %v2501_v19 }
 0x790   :  { %v2513_v58 = vsel %vm2512_vm1, %v2511_v9, 0.0 }
 0x791   :  { %v2514_v60 = vrot.slane %v2513_v58, 4 }
 0x793   :  { %v2515_v63 = vadd.f32 %v2514_v60, %v2513_v58 }
 0x795   :  { %v2516_v5 = vrot.slane %v2515_v63, 2 }
 0x797   :  { %v2517_v16 = vadd.f32 %v2516_v5, %v2515_v63 }
 0x799   :  { %v2518_v13 = vrot.slane %v2517_v16, 1 }
 0x79b   :  { %v2519_v25 = vadd.f32 %v2518_v13, %v2517_v16 }
 0x79d   :  { %v2521_v61 = vmul.f32 0.25, %v2519_v25 }
 0x79f   :  { %v2527_v26 = vsub.f32 0.0, %v2521_v61  ;;  %v2531_v11 = vadd.f32 %v2526_v62, %v2521_v61 }
 0x7a1   :  { %v2528_v10 = vadd.f32 %v2527_v26, %v2526_v62  ;;  %v2532_v29 = vmul.f32 %v2531_v11, %v2529_v24 }
 0x7a3   :  { %v2530_v22 = vmul.f32 %v2529_v24, %v2528_v10 }
 0x7a5   :  { %v2534_v0 = vrot.slane %v2530_v22, 7 }
 0x7a7   :  { %vm2536_vm3 = vcmp.gt.f32.partialorder %v2532_v29, %v2534_v0 }
 0x7a8   :  { %v2744_v30 = vsel %vm2536_vm3, 1.0, %v3240_v56 }
 0x7a9   :  { %v2540_v35 = vsel %vm2539_vm2, %v2744_v30, -inf }
 0x7aa   :  { %2541 = vmax.xlane.f32.xlu0 %v2540_v35 }
 0x837   :  { %v2542_v57 = vpop.xlane.xlu0 %2541 }
 0x838   :  { %v2543_v17 = vsub.f32 %v2744_v30, %v2542_v57 }
 0x83a   :  { %v2544_v21 = vmul.f32 1.442695, %v2543_v17 }
 0x83c   :  { %3210 = vpow2.f32 %v2544_v21 }
 0x846   :  { %v3211_v38 = vpop.eup %3210 }
 0x847   :  { %v2546_v3 = vsel %vm2539_vm2, %v3211_v38, 0.0 }
 0x848   :  { %2547 = vadd.xlane.f32.xlu0 %v2546_v3 }
 0x8d5   :  { %v2548_v37 = vpop.xlane.xlu0 %2547 }
 0x8d6   :  { %3212 = vrcp.f32 %v2548_v37 }
 0x8e0   :  { %v3213_v4 = vpop.eup %3212 }
 0x8e1   :  { %v2550_v46 = vmul.f32 %v3213_v4, %v3211_v38 }
 0x8e3   :  { %2551 = vst.msk [vmem:[#allocation6 - $0x1] sm:$0x2] %vm2539_vm2, %v2550_v46 }
 0x8e4   :  { %3225 = shalt.err (!%p3222_p4)
}
 0x8e5   :  { %s3226_s27 = scalar_lea.hbm %s4293_s17, 16 }
 0x8e6   :  { %p3227_p5 = scmp.ne.s32.totalorder %s4293_s17, %s3226_s27  ;;  %p3230_p6 = scmp.lt.u32.totalorder %s3226_s27, %s4293_s17 }
 0x8e8   :  { %p3232_p7 = pnand %p3230_p6, %p3227_p5 }
 0x8ea   :  { %3235 = shalt.err (!%p3232_p7)
}
 0x8eb   :  { %2561 = dma.vmem_to_hbm [thread:$0]  %s2559_s15, 16, %s4293_s17, [#allocation7]  }
 0x8ec   :  { %3236 = dma.done.wait [#allocation7], 16  }
 0x8ed   :  { %3237 = vsyncadd [#allocation7], 4294967280 }
 0x8ee   :  { %2565 = vsyncpa [#allocation7], 1 }

</bundles_post_ra>
